<compile_context>
chip_gen: v7x
topology: tpu7x:2x2x1
jax: 0.10.0
libtpu: 0.0.40
codegen_flags: <defaults>
</compile_context>

<pallas_src>
import functools

import jax
import jax.numpy as jnp
from jax.experimental import pallas as pl
from jax.experimental.pallas import tpu as pltpu

STATE_DIM = 32
ACTION_DIM = 8
HIDDEN = (384, 256, 256, 128)
EPS = 1e-5          # PyTorch nn.LayerNorm default
NEG_SLOPE = 0.1     # nn.LeakyReLU(0.1)
VEC_PAD = 384       # lane width of the packed vector-parameter buffer
HEAD_PAD = 128      # head output padded to a lane-dense 128 lanes

# Packed vector-parameter buffer (shape (40, VEC_PAD), f32), 8-row groups:
#   group i (rows 8*i .. 8*i+7), i = 0..3 : row 0 = b_{i+1}, row 1 = gamma_{i+1},
#                                           row 2 = beta_{i+1}, rest zero padding
#   group 4 (rows 32..39)                 : row 0 = head bias b5 (first
#                                           ACTION_DIM lanes valid), rest zero


def dql_kernel(x_ref, w1, w2, w3, w4, w5, vec_ref, out_ref):
    def block(h, w_ref, group, width):
        w = w_ref[...]
        row0 = 8 * group                      # 8-sublane-aligned group start
        b = vec_ref[row0:row0 + 1, :width]
        g = vec_ref[row0 + 1:row0 + 2, :width]
        be = vec_ref[row0 + 2:row0 + 3, :width]
        # Linear (MXU, f32 accumulation; inputs cast to the weight dtype so
        # bf16 weights feed the bf16-native MXU on every generation).
        h = jnp.dot(h.astype(w.dtype), w,
                    preferred_element_type=jnp.float32) + b
        # LayerNorm — single reduction pass: var = E[h^2] - mu^2 (f32),
        # clamped at 0 to guard against f32 rounding going negative.
        mu = jnp.mean(h, axis=-1, keepdims=True)
        var = jnp.maximum(jnp.mean(h * h, axis=-1, keepdims=True) - mu * mu,
                          0.0)
        h = (h - mu) * jax.lax.rsqrt(var + EPS) * g + be
        # Dropout(p=0.1) == identity in eval mode.
        # LeakyReLU(0.1) as max(h, 0.1*h): 2 VALU ops/elem vs 3 for where().
        return jnp.maximum(h, NEG_SLOPE * h)

    h = x_ref[...].astype(jnp.float32)
    h = block(h, w1, 0, HIDDEN[0])
    h = block(h, w2, 1, HIDDEN[1])
    h = block(h, w3, 2, HIDDEN[2])
    h = block(h, w4, 3, HIDDEN[3])

    # Head: Linear(128, action_dim), lane-padded to HEAD_PAD output lanes so
    # the store is an unmasked lane-dense vst.
    w = w5[...]
    b5 = vec_ref[32:33, :HEAD_PAD]
    out_ref[...] = (jnp.dot(h.astype(w.dtype), w,
                            preferred_element_type=jnp.float32)
                    + b5).astype(out_ref.dtype)


def _round_up(n, m):
    return ((n + m - 1) // m) * m


def _choose_tb(B):
    """Batch-tile heuristic.

    Small batches (<=256): one grid step — the kernel is launch / weight-DMA
    latency bound.  Large batches: tiles up to 1024 rows to amortize the
    ~0.35 us per-grid-step overhead, but never fewer than 2 grid steps so the
    "parallel" batch axis can shard across both v7x TensorCores.
    """
    if B <= 256:
        return _round_up(B, 8)
    half = _round_up((B + 1) // 2, 8)
    return min(1024, half)


@functools.partial(jax.jit, static_argnames=("tb",))
def _dql_pallas(x_pad, w1, w2, w3, w4, w5p, vecs, *, tb):
    Bp, S = x_pad.shape
    weights = (w1, w2, w3, w4, w5p)

    def resident_spec(arr):
        # Grid-invariant operand: stays resident in VMEM; single buffer is
        # enough (no re-fetch across grid steps).
        return pl.BlockSpec(arr.shape, lambda i: (0, 0),
                            pipeline_mode=pl.Buffered(1))

    in_specs = ([pl.BlockSpec((tb, S), lambda i: (i, 0))]
                + [resident_spec(w) for w in weights]
                + [resident_spec(vecs)])

    return pl.pallas_call(
        dql_kernel,
        out_shape=jax.ShapeDtypeStruct((Bp, HEAD_PAD), jnp.float32),
        grid_spec=pltpu.PrefetchScalarGridSpec(
            num_scalar_prefetch=0,
            grid=(Bp // tb,),
            in_specs=in_specs,
            out_specs=pl.BlockSpec((tb, HEAD_PAD), lambda i: (i, 0)),
        ),
        compiler_params=pltpu.CompilerParams(
            dimension_semantics=("parallel",)),
    )(x_pad, *weights, vecs)


def dql_forward(x, packed, *, tb=None):
    """x: (B, STATE_DIM). packed = pack_params(params). Returns (B, ACTION_DIM)."""
    weights, vecs = packed
    B, S = x.shape
    if tb is None:
        tb = _choose_tb(B)
    Bp = _round_up(B, tb)
    if Bp != B:
        x = jnp.pad(x, ((0, Bp - B), (0, 0)))
    out = _dql_pallas(x, *weights, vecs, tb=tb)
    return out[:B, :ACTION_DIM]


def init_params(key):
    """PyTorch-default-style init: Linear uniform +/- 1/sqrt(fan_in);
    LayerNorm gamma=1, beta=0."""
    dims = [STATE_DIM, *HIDDEN, ACTION_DIM]
    params = {}
    keys = jax.random.split(key, len(dims) - 1)
    for i, (fan_in, fan_out) in enumerate(zip(dims[:-1], dims[1:]), start=1):
        kw, kb = jax.random.split(keys[i - 1])
        bound = 1.0 / (fan_in ** 0.5)
        params[f"w{i}"] = jax.random.uniform(
            kw, (fan_in, fan_out), jnp.float32, -bound, bound)
        params[f"b{i}"] = jax.random.uniform(
            kb, (fan_out,), jnp.float32, -bound, bound)
        if i <= 4:
            params[f"g{i}"] = jnp.ones((fan_out,), jnp.float32)
            params[f"be{i}"] = jnp.zeros((fan_out,), jnp.float32)
    return params


def pack_params(p, weight_dtype=jnp.bfloat16):
    """Consolidate 18 parameter tensors into 6 kernel operands:
       5 weight matrices (head lane-padded to HEAD_PAD; bf16 by default on all
       generations — pass weight_dtype=jnp.float32 for exact-f32 validation)
       + one packed (40, VEC_PAD) f32 buffer with every bias / LayerNorm
       vector, each layer's vectors in its own 8-sublane-aligned group."""
    def row(v):
        return jnp.pad(v, (0, VEC_PAD - v.shape[0]))[None, :]

    groups = []
    for i in range(1, 5):
        groups.append(jnp.concatenate(
            [row(p[f"b{i}"]), row(p[f"g{i}"]), row(p[f"be{i}"]),
             jnp.zeros((5, VEC_PAD), jnp.float32)], axis=0))
    groups.append(jnp.concatenate(
        [row(p["b5"]), jnp.zeros((7, VEC_PAD), jnp.float32)], axis=0))
    vecs = jnp.concatenate(groups, axis=0).astype(jnp.float32)  # (40, VEC_PAD)

    w5p = jnp.pad(p["w5"], ((0, 0), (0, HEAD_PAD - ACTION_DIM)))
    weights = tuple(p[f"w{i}"].astype(weight_dtype) for i in range(1, 5)) \
        + (w5p.astype(weight_dtype),)
    return weights, vecs


def reference_forward(x, p):
    """Pure-JAX f32 reference (two-pass LayerNorm, unpadded params)."""
    h = x
    for i in range(1, 5):
        h = h @ p[f"w{i}"] + p[f"b{i}"]
        mu = jnp.mean(h, axis=-1, keepdims=True)
        var = jnp.mean((h - mu) ** 2, axis=-1, keepdims=True)
        h = (h - mu) * jax.lax.rsqrt(var + EPS) * p[f"g{i}"] + p[f"be{i}"]
        h = jnp.where(h >= 0, h, NEG_SLOPE * h)
    return h @ p["w5"] + p["b5"]


if __name__ == "__main__":
    key = jax.random.PRNGKey(0)
    kx, kp = jax.random.split(key)

    B = 16
    x = jax.random.normal(kx, (B, STATE_DIM), jnp.float32)
    params = init_params(kp)
    ref = reference_forward(x, params)

    # 1) Exact-math validation with f32 weights (tight tolerance).
    packed_f32 = pack_params(params, weight_dtype=jnp.float32)
    out_f32 = jax.block_until_ready(dql_forward(x, packed_f32))
    assert out_f32.shape == (B, ACTION_DIM)
    assert jnp.allclose(out_f32, ref, atol=1e-4, rtol=1e-4), \
        "f32 kernel mismatch vs reference"

    # 2) Default (bf16-weight) fast path: bf16 matmul inputs / f32 accumulation,
    #    so compare against the f32 reference with a loosened tolerance.
    packed = pack_params(params)            # bf16 weights (default, all gens)
    out = jax.block_until_ready(dql_forward(x, packed))
    assert out.shape == (B, ACTION_DIM)
    assert jnp.allclose(out, ref, atol=2e-2, rtol=2e-2), \
        "bf16 kernel mismatch vs reference"

    print("KERNEL_OK")
</pallas_src>

<mosaic_0001>
module attributes {stable_mosaic.version = 11 : i64} {
  func.func @dql_kernel(%arg0: i32, %arg1: memref<16x32xf32, #tpu.memory_space<vmem>>, %arg2: memref<32x384xf32, #tpu.memory_space<vmem>>, %arg3: memref<384x256xf32, #tpu.memory_space<vmem>>, %arg4: memref<256x256xf32, #tpu.memory_space<vmem>>, %arg5: memref<256x128xf32, #tpu.memory_space<vmem>>, %arg6: memref<128x128xf32, #tpu.memory_space<vmem>>, %arg7: memref<40x384xf32, #tpu.memory_space<vmem>>, %arg8: memref<16x128xf32, #tpu.memory_space<vmem>>) attributes {dimension_semantics = [#tpu.dimension_semantics<parallel>], iteration_bounds = array<i64: 1>, scalar_prefetch = 0 : i64, scratch_operands = 0 : i64, tpu.core_type = #tpu.core_type<tc>, window_params = [{transform_indices = @transform_0, window_bounds = array<i64: 16, 32>}, {pipeline_mode = #tpu.pipeline_mode<synchronous>, transform_indices = @transform_1, window_bounds = array<i64: 32, 384>}, {pipeline_mode = #tpu.pipeline_mode<synchronous>, transform_indices = @transform_2, window_bounds = array<i64: 384, 256>}, {pipeline_mode = #tpu.pipeline_mode<synchronous>, transform_indices = @transform_3, window_bounds = array<i64: 256, 256>}, {pipeline_mode = #tpu.pipeline_mode<synchronous>, transform_indices = @transform_4, window_bounds = array<i64: 256, 128>}, {pipeline_mode = #tpu.pipeline_mode<synchronous>, transform_indices = @transform_5, window_bounds = array<i64: 128, 128>}, {pipeline_mode = #tpu.pipeline_mode<synchronous>, transform_indices = @transform_6, window_bounds = array<i64: 40, 384>}, {transform_indices = @transform_7, window_bounds = array<i64: 16, 128>}]} {
    %c0 = arith.constant 0 : index
    %c0_0 = arith.constant 0 : index
    %0 = vector.load %arg1[%c0, %c0_0] : memref<16x32xf32, #tpu.memory_space<vmem>>, vector<16x32xf32>
    %c0_1 = arith.constant 0 : index
    %c0_2 = arith.constant 0 : index
    %1 = vector.load %arg2[%c0_1, %c0_2] : memref<32x384xf32, #tpu.memory_space<vmem>>, vector<32x384xf32>
    %c0_3 = arith.constant 0 : index
    %c0_4 = arith.constant 0 : index
    %2 = vector.load %arg7[%c0_3, %c0_4] : memref<40x384xf32, #tpu.memory_space<vmem>>, vector<1x384xf32>
    %c1 = arith.constant 1 : index
    %c0_5 = arith.constant 0 : index
    %3 = vector.load %arg7[%c1, %c0_5] : memref<40x384xf32, #tpu.memory_space<vmem>>, vector<1x384xf32>
    %c2 = arith.constant 2 : index
    %c0_6 = arith.constant 0 : index
    %4 = vector.load %arg7[%c2, %c0_6] : memref<40x384xf32, #tpu.memory_space<vmem>>, vector<1x384xf32>
    %cst = arith.constant dense<0.000000e+00> : vector<16x384xf32>
    %5 = tpu.matmul %0, %1, %cst {dimension_numbers = #tpu.dot_dimension_numbers<[1], [0], [0], [1], [0, 0, 1, 1], [], []>} : vector<16x32xf32>, vector<32x384xf32>, vector<16x384xf32> -> vector<16x384xf32>
    %6 = vector.broadcast %2 : vector<1x384xf32> to vector<16x384xf32>
    %7 = arith.addf %5, %6 : vector<16x384xf32>
    %cst_7 = arith.constant dense<0.000000e+00> : vector<16xf32>
    %8 = vector.multi_reduction <add>, %7, %cst_7 [1] : vector<16x384xf32> to vector<16xf32>
    %9 = vector.shape_cast %8 : vector<16xf32> to vector<16x1xf32>
    %cst_8 = arith.constant 3.840000e+02 : f32
    %10 = vector.broadcast %cst_8 : f32 to vector<16x1xf32>
    %11 = arith.divf %9, %10 : vector<16x1xf32>
    %12 = arith.mulf %7, %7 : vector<16x384xf32>
    %cst_9 = arith.constant dense<0.000000e+00> : vector<16xf32>
    %13 = vector.multi_reduction <add>, %12, %cst_9 [1] : vector<16x384xf32> to vector<16xf32>
    %14 = vector.shape_cast %13 : vector<16xf32> to vector<16x1xf32>
    %cst_10 = arith.constant 3.840000e+02 : f32
    %15 = vector.broadcast %cst_10 : f32 to vector<16x1xf32>
    %16 = arith.divf %14, %15 : vector<16x1xf32>
    %17 = arith.mulf %11, %11 : vector<16x1xf32>
    %18 = arith.subf %16, %17 : vector<16x1xf32>
    %cst_11 = arith.constant 0.000000e+00 : f32
    %19 = vector.broadcast %cst_11 : f32 to vector<16x1xf32>
    %20 = arith.maximumf %18, %19 : vector<16x1xf32>
    %21 = vector.broadcast %11 : vector<16x1xf32> to vector<16x384xf32>
    %22 = arith.subf %7, %21 : vector<16x384xf32>
    %cst_12 = arith.constant 9.99999974E-6 : f32
    %23 = vector.broadcast %cst_12 : f32 to vector<16x1xf32>
    %24 = arith.addf %20, %23 : vector<16x1xf32>
    %25 = math.rsqrt %24 : vector<16x1xf32>
    %26 = vector.broadcast %25 : vector<16x1xf32> to vector<16x384xf32>
    %27 = arith.mulf %22, %26 : vector<16x384xf32>
    %28 = vector.broadcast %3 : vector<1x384xf32> to vector<16x384xf32>
    %29 = arith.mulf %27, %28 : vector<16x384xf32>
    %30 = vector.broadcast %4 : vector<1x384xf32> to vector<16x384xf32>
    %31 = arith.addf %29, %30 : vector<16x384xf32>
    %cst_13 = arith.constant 1.000000e-01 : f32
    %32 = vector.broadcast %cst_13 : f32 to vector<16x384xf32>
    %33 = arith.mulf %32, %31 : vector<16x384xf32>
    %34 = arith.maximumf %31, %33 : vector<16x384xf32>
    %c0_14 = arith.constant 0 : index
    %c0_15 = arith.constant 0 : index
    %35 = vector.load %arg3[%c0_14, %c0_15] : memref<384x256xf32, #tpu.memory_space<vmem>>, vector<384x256xf32>
    %c8 = arith.constant 8 : index
    %c0_16 = arith.constant 0 : index
    %36 = vector.load %arg7[%c8, %c0_16] : memref<40x384xf32, #tpu.memory_space<vmem>>, vector<1x256xf32>
    %c9 = arith.constant 9 : index
    %c0_17 = arith.constant 0 : index
    %37 = vector.load %arg7[%c9, %c0_17] : memref<40x384xf32, #tpu.memory_space<vmem>>, vector<1x256xf32>
    %c10 = arith.constant 10 : index
    %c0_18 = arith.constant 0 : index
    %38 = vector.load %arg7[%c10, %c0_18] : memref<40x384xf32, #tpu.memory_space<vmem>>, vector<1x256xf32>
    %cst_19 = arith.constant dense<0.000000e+00> : vector<16x256xf32>
    %39 = tpu.matmul %34, %35, %cst_19 {dimension_numbers = #tpu.dot_dimension_numbers<[1], [0], [0], [1], [0, 0, 1, 1], [], []>} : vector<16x384xf32>, vector<384x256xf32>, vector<16x256xf32> -> vector<16x256xf32>
    %40 = vector.broadcast %36 : vector<1x256xf32> to vector<16x256xf32>
    %41 = arith.addf %39, %40 : vector<16x256xf32>
    %cst_20 = arith.constant dense<0.000000e+00> : vector<16xf32>
    %42 = vector.multi_reduction <add>, %41, %cst_20 [1] : vector<16x256xf32> to vector<16xf32>
    %43 = vector.shape_cast %42 : vector<16xf32> to vector<16x1xf32>
    %cst_21 = arith.constant 2.560000e+02 : f32
    %44 = vector.broadcast %cst_21 : f32 to vector<16x1xf32>
    %45 = arith.divf %43, %44 : vector<16x1xf32>
    %46 = arith.mulf %41, %41 : vector<16x256xf32>
    %cst_22 = arith.constant dense<0.000000e+00> : vector<16xf32>
    %47 = vector.multi_reduction <add>, %46, %cst_22 [1] : vector<16x256xf32> to vector<16xf32>
    %48 = vector.shape_cast %47 : vector<16xf32> to vector<16x1xf32>
    %cst_23 = arith.constant 2.560000e+02 : f32
    %49 = vector.broadcast %cst_23 : f32 to vector<16x1xf32>
    %50 = arith.divf %48, %49 : vector<16x1xf32>
    %51 = arith.mulf %45, %45 : vector<16x1xf32>
    %52 = arith.subf %50, %51 : vector<16x1xf32>
    %cst_24 = arith.constant 0.000000e+00 : f32
    %53 = vector.broadcast %cst_24 : f32 to vector<16x1xf32>
    %54 = arith.maximumf %52, %53 : vector<16x1xf32>
    %55 = vector.broadcast %45 : vector<16x1xf32> to vector<16x256xf32>
    %56 = arith.subf %41, %55 : vector<16x256xf32>
    %cst_25 = arith.constant 9.99999974E-6 : f32
    %57 = vector.broadcast %cst_25 : f32 to vector<16x1xf32>
    %58 = arith.addf %54, %57 : vector<16x1xf32>
    %59 = math.rsqrt %58 : vector<16x1xf32>
    %60 = vector.broadcast %59 : vector<16x1xf32> to vector<16x256xf32>
    %61 = arith.mulf %56, %60 : vector<16x256xf32>
    %62 = vector.broadcast %37 : vector<1x256xf32> to vector<16x256xf32>
    %63 = arith.mulf %61, %62 : vector<16x256xf32>
    %64 = vector.broadcast %38 : vector<1x256xf32> to vector<16x256xf32>
    %65 = arith.addf %63, %64 : vector<16x256xf32>
    %cst_26 = arith.constant 1.000000e-01 : f32
    %66 = vector.broadcast %cst_26 : f32 to vector<16x256xf32>
    %67 = arith.mulf %66, %65 : vector<16x256xf32>
    %68 = arith.maximumf %65, %67 : vector<16x256xf32>
    %c0_27 = arith.constant 0 : index
    %c0_28 = arith.constant 0 : index
    %69 = vector.load %arg4[%c0_27, %c0_28] : memref<256x256xf32, #tpu.memory_space<vmem>>, vector<256x256xf32>
    %c16 = arith.constant 16 : index
    %c0_29 = arith.constant 0 : index
    %70 = vector.load %arg7[%c16, %c0_29] : memref<40x384xf32, #tpu.memory_space<vmem>>, vector<1x256xf32>
    %c17 = arith.constant 17 : index
    %c0_30 = arith.constant 0 : index
    %71 = vector.load %arg7[%c17, %c0_30] : memref<40x384xf32, #tpu.memory_space<vmem>>, vector<1x256xf32>
    %c18 = arith.constant 18 : index
    %c0_31 = arith.constant 0 : index
    %72 = vector.load %arg7[%c18, %c0_31] : memref<40x384xf32, #tpu.memory_space<vmem>>, vector<1x256xf32>
    %cst_32 = arith.constant dense<0.000000e+00> : vector<16x256xf32>
    %73 = tpu.matmul %68, %69, %cst_32 {dimension_numbers = #tpu.dot_dimension_numbers<[1], [0], [0], [1], [0, 0, 1, 1], [], []>} : vector<16x256xf32>, vector<256x256xf32>, vector<16x256xf32> -> vector<16x256xf32>
    %74 = vector.broadcast %70 : vector<1x256xf32> to vector<16x256xf32>
    %75 = arith.addf %73, %74 : vector<16x256xf32>
    %cst_33 = arith.constant dense<0.000000e+00> : vector<16xf32>
    %76 = vector.multi_reduction <add>, %75, %cst_33 [1] : vector<16x256xf32> to vector<16xf32>
    %77 = vector.shape_cast %76 : vector<16xf32> to vector<16x1xf32>
    %cst_34 = arith.constant 2.560000e+02 : f32
    %78 = vector.broadcast %cst_34 : f32 to vector<16x1xf32>
    %79 = arith.divf %77, %78 : vector<16x1xf32>
    %80 = arith.mulf %75, %75 : vector<16x256xf32>
    %cst_35 = arith.constant dense<0.000000e+00> : vector<16xf32>
    %81 = vector.multi_reduction <add>, %80, %cst_35 [1] : vector<16x256xf32> to vector<16xf32>
    %82 = vector.shape_cast %81 : vector<16xf32> to vector<16x1xf32>
    %cst_36 = arith.constant 2.560000e+02 : f32
    %83 = vector.broadcast %cst_36 : f32 to vector<16x1xf32>
    %84 = arith.divf %82, %83 : vector<16x1xf32>
    %85 = arith.mulf %79, %79 : vector<16x1xf32>
    %86 = arith.subf %84, %85 : vector<16x1xf32>
    %cst_37 = arith.constant 0.000000e+00 : f32
    %87 = vector.broadcast %cst_37 : f32 to vector<16x1xf32>
    %88 = arith.maximumf %86, %87 : vector<16x1xf32>
    %89 = vector.broadcast %79 : vector<16x1xf32> to vector<16x256xf32>
    %90 = arith.subf %75, %89 : vector<16x256xf32>
    %cst_38 = arith.constant 9.99999974E-6 : f32
    %91 = vector.broadcast %cst_38 : f32 to vector<16x1xf32>
    %92 = arith.addf %88, %91 : vector<16x1xf32>
    %93 = math.rsqrt %92 : vector<16x1xf32>
    %94 = vector.broadcast %93 : vector<16x1xf32> to vector<16x256xf32>
    %95 = arith.mulf %90, %94 : vector<16x256xf32>
    %96 = vector.broadcast %71 : vector<1x256xf32> to vector<16x256xf32>
    %97 = arith.mulf %95, %96 : vector<16x256xf32>
    %98 = vector.broadcast %72 : vector<1x256xf32> to vector<16x256xf32>
    %99 = arith.addf %97, %98 : vector<16x256xf32>
    %cst_39 = arith.constant 1.000000e-01 : f32
    %100 = vector.broadcast %cst_39 : f32 to vector<16x256xf32>
    %101 = arith.mulf %100, %99 : vector<16x256xf32>
    %102 = arith.maximumf %99, %101 : vector<16x256xf32>
    %c0_40 = arith.constant 0 : index
    %c0_41 = arith.constant 0 : index
    %103 = vector.load %arg5[%c0_40, %c0_41] : memref<256x128xf32, #tpu.memory_space<vmem>>, vector<256x128xf32>
    %c24 = arith.constant 24 : index
    %c0_42 = arith.constant 0 : index
    %104 = vector.load %arg7[%c24, %c0_42] : memref<40x384xf32, #tpu.memory_space<vmem>>, vector<1x128xf32>
    %c25 = arith.constant 25 : index
    %c0_43 = arith.constant 0 : index
    %105 = vector.load %arg7[%c25, %c0_43] : memref<40x384xf32, #tpu.memory_space<vmem>>, vector<1x128xf32>
    %c26 = arith.constant 26 : index
    %c0_44 = arith.constant 0 : index
    %106 = vector.load %arg7[%c26, %c0_44] : memref<40x384xf32, #tpu.memory_space<vmem>>, vector<1x128xf32>
    %cst_45 = arith.constant dense<0.000000e+00> : vector<16x128xf32>
    %107 = tpu.matmul %102, %103, %cst_45 {dimension_numbers = #tpu.dot_dimension_numbers<[1], [0], [0], [1], [0, 0, 1, 1], [], []>} : vector<16x256xf32>, vector<256x128xf32>, vector<16x128xf32> -> vector<16x128xf32>
    %108 = vector.broadcast %104 : vector<1x128xf32> to vector<16x128xf32>
    %109 = arith.addf %107, %108 : vector<16x128xf32>
    %cst_46 = arith.constant dense<0.000000e+00> : vector<16xf32>
    %110 = vector.multi_reduction <add>, %109, %cst_46 [1] : vector<16x128xf32> to vector<16xf32>
    %111 = vector.shape_cast %110 : vector<16xf32> to vector<16x1xf32>
    %cst_47 = arith.constant 1.280000e+02 : f32
    %112 = vector.broadcast %cst_47 : f32 to vector<16x1xf32>
    %113 = arith.divf %111, %112 : vector<16x1xf32>
    %114 = arith.mulf %109, %109 : vector<16x128xf32>
    %cst_48 = arith.constant dense<0.000000e+00> : vector<16xf32>
    %115 = vector.multi_reduction <add>, %114, %cst_48 [1] : vector<16x128xf32> to vector<16xf32>
    %116 = vector.shape_cast %115 : vector<16xf32> to vector<16x1xf32>
    %cst_49 = arith.constant 1.280000e+02 : f32
    %117 = vector.broadcast %cst_49 : f32 to vector<16x1xf32>
    %118 = arith.divf %116, %117 : vector<16x1xf32>
    %119 = arith.mulf %113, %113 : vector<16x1xf32>
    %120 = arith.subf %118, %119 : vector<16x1xf32>
    %cst_50 = arith.constant 0.000000e+00 : f32
    %121 = vector.broadcast %cst_50 : f32 to vector<16x1xf32>
    %122 = arith.maximumf %120, %121 : vector<16x1xf32>
    %123 = vector.broadcast %113 : vector<16x1xf32> to vector<16x128xf32>
    %124 = arith.subf %109, %123 : vector<16x128xf32>
    %cst_51 = arith.constant 9.99999974E-6 : f32
    %125 = vector.broadcast %cst_51 : f32 to vector<16x1xf32>
    %126 = arith.addf %122, %125 : vector<16x1xf32>
    %127 = math.rsqrt %126 : vector<16x1xf32>
    %128 = vector.broadcast %127 : vector<16x1xf32> to vector<16x128xf32>
    %129 = arith.mulf %124, %128 : vector<16x128xf32>
    %130 = vector.broadcast %105 : vector<1x128xf32> to vector<16x128xf32>
    %131 = arith.mulf %129, %130 : vector<16x128xf32>
    %132 = vector.broadcast %106 : vector<1x128xf32> to vector<16x128xf32>
    %133 = arith.addf %131, %132 : vector<16x128xf32>
    %cst_52 = arith.constant 1.000000e-01 : f32
    %134 = vector.broadcast %cst_52 : f32 to vector<16x128xf32>
    %135 = arith.mulf %134, %133 : vector<16x128xf32>
    %136 = arith.maximumf %133, %135 : vector<16x128xf32>
    %c0_53 = arith.constant 0 : index
    %c0_54 = arith.constant 0 : index
    %137 = vector.load %arg6[%c0_53, %c0_54] : memref<128x128xf32, #tpu.memory_space<vmem>>, vector<128x128xf32>
    %c32 = arith.constant 32 : index
    %c0_55 = arith.constant 0 : index
    %138 = vector.load %arg7[%c32, %c0_55] : memref<40x384xf32, #tpu.memory_space<vmem>>, vector<1x128xf32>
    %cst_56 = arith.constant dense<0.000000e+00> : vector<16x128xf32>
    %139 = tpu.matmul %136, %137, %cst_56 {dimension_numbers = #tpu.dot_dimension_numbers<[1], [0], [0], [1], [0, 0, 1, 1], [], []>} : vector<16x128xf32>, vector<128x128xf32>, vector<16x128xf32> -> vector<16x128xf32>
    %140 = vector.broadcast %138 : vector<1x128xf32> to vector<16x128xf32>
    %141 = arith.addf %139, %140 : vector<16x128xf32>
    %c0_57 = arith.constant 0 : index
    %c0_58 = arith.constant 0 : index
    %142 = vector.load %arg8[%c0_57, %c0_58] : memref<16x128xf32, #tpu.memory_space<vmem>>, vector<16x128xf32>
    tpu.vector_store %arg8[%c0_57, %c0_58], %141 {strides = array<i32>} : memref<16x128xf32, #tpu.memory_space<vmem>>, vector<16x128xf32>,
    return
  }
  func.func @transform_0(%arg0: i32) -> (i32, i32) {
    %c0_i32 = arith.constant 0 : i32
    %c0_i32_0 = arith.constant 0 : i32
    return %arg0, %c0_i32 : i32, i32
  }
  func.func @transform_1(%arg0: i32) -> (i32, i32) {
    %c0_i32 = arith.constant 0 : i32
    %c0_i32_0 = arith.constant 0 : i32
    %c0_i32_1 = arith.constant 0 : i32
    return %c0_i32, %c0_i32_0 : i32, i32
  }
  func.func @transform_2(%arg0: i32) -> (i32, i32) {
    %c0_i32 = arith.constant 0 : i32
    %c0_i32_0 = arith.constant 0 : i32
    %c0_i32_1 = arith.constant 0 : i32
    return %c0_i32, %c0_i32_0 : i32, i32
  }
  func.func @transform_3(%arg0: i32) -> (i32, i32) {
    %c0_i32 = arith.constant 0 : i32
    %c0_i32_0 = arith.constant 0 : i32
    %c0_i32_1 = arith.constant 0 : i32
    return %c0_i32, %c0_i32_0 : i32, i32
  }
  func.func @transform_4(%arg0: i32) -> (i32, i32) {
    %c0_i32 = arith.constant 0 : i32
    %c0_i32_0 = arith.constant 0 : i32
    %c0_i32_1 = arith.constant 0 : i32
    return %c0_i32, %c0_i32_0 : i32, i32
  }
  func.func @transform_5(%arg0: i32) -> (i32, i32) {
    %c0_i32 = arith.constant 0 : i32
    %c0_i32_0 = arith.constant 0 : i32
    %c0_i32_1 = arith.constant 0 : i32
    return %c0_i32, %c0_i32_0 : i32, i32
  }
  func.func @transform_6(%arg0: i32) -> (i32, i32) {
    %c0_i32 = arith.constant 0 : i32
    %c0_i32_0 = arith.constant 0 : i32
    %c0_i32_1 = arith.constant 0 : i32
    return %c0_i32, %c0_i32_0 : i32, i32
  }
  func.func @transform_7(%arg0: i32) -> (i32, i32) {
    %c0_i32 = arith.constant 0 : i32
    %c0_i32_0 = arith.constant 0 : i32
    return %arg0, %c0_i32 : i32, i32
  }
}

</mosaic_0001>

<bundles_post_ra>
// kernel: _dql_pallas.1
= control target key start
LH: loop header
LB: loop body
LE: loop exit
PB: predicated region body
PF: predicated region fallthrough
CT: control target
= control target key end

     0   :  { %12 = vsyncpa [#allocation3], 0  ;;  %s2187_s0 = inlined_call_operand.hbm [shape: f32[16,32], index: 0, kind: input, shape index: {}]   ;;  %s2188_s1 = inlined_call_operand.hbm [shape: f32[32,384], index: 1, kind: input, shape index: {}]   ;;  %s2189_s2 = inlined_call_operand.hbm [shape: f32[384,256], index: 2, kind: input, shape index: {}]   ;;  %s2190_s3 = inlined_call_operand.hbm [shape: f32[256,256], index: 3, kind: input, shape index: {}]   ;;  %s2191_s4 = inlined_call_operand.hbm [shape: f32[256,128], index: 4, kind: input, shape index: {}]   ;;  %s2192_s5 = inlined_call_operand.hbm [shape: f32[128,128], index: 5, kind: input, shape index: {}]   ;;  %s2193_s6 = inlined_call_operand.hbm [shape: f32[40,384], index: 6, kind: input, shape index: {}]   ;;  %s2194_s7 = inlined_call_operand.hbm [shape: f32[16,128], index: 7, kind: output, shape index: {}]  }
   0x1   :  { %13 = vsyncpa [#allocation6], 0 }
   0x2   :  { %14 = vsyncpa [#allocation9], 0 }
   0x3   :  { %15 = vsyncpa [#allocation12], 0 }
   0x4   :  { %16 = vsyncpa [#allocation4], 0  ;;  %s1837_s24 = smov [#allocation5]   ;;  %s1651_s28 = scalar_lea.hbm %s2188_s1, 1536 }
   0x5   :  { %s34_s25 = sshll.u32 %s1837_s24, 4  ;;  %p1652_p0 = scmp.ne.s32.totalorder %s2188_s1, %s1651_s28  ;;  %s35_s25 = int_to_ptr.vmem [resolvable:$true] %s34_s25 }
   0x6   :  { %p1655_p1 = scmp.lt.u32.totalorder %s1651_s28, %s2188_s1 }
   0x8   :  { %p1657_p2 = pnand %p1655_p1, %p1652_p0 }
   0xa   :  { %1660 = shalt.err (!%p1657_p2)
}
   0xb   :  { %s1661_s10 = scalar_lea.vmem %s35_s25, 1536  ;;  %p1666_p4 = scmp.lt.s32.totalorder %s35_s25, %s35_s25 }
   0xc   :  { %p1662_p3 = scmp.ne.s32.totalorder %s35_s25, %s1661_s10  ;;  %p1667_p5 = scmp.lt.s32.totalorder %s1661_s10, %s1661_s10 }
   0xe   :  { %p1668_p6 = por %p1667_p5, %p1666_p4 }
  0x10   :  { %p1669_p7 = pnand %p1668_p6, %p1662_p3 }
  0x12   :  { %1672 = shalt.err (!%p1669_p7)
}
  0x13   :  { %s1838_s11 = smov 384   ;;  %s1839_s12 = smov 24  }
  0x14   :  { %40 = dma.hbm_to_vmem [thread:$0]  %s2188_s1, 1536, %s35_s25, [#allocation6], %s1838_s11, %s1838_s11, %s1839_s12  }
  0x15   :  { %s1840_s15 = smov [#allocation8]   ;;  %s1673_s19 = scalar_lea.hbm %s2190_s3, 8192 }
  0x16   :  { %s58_s16 = sshll.u32 %s1840_s15, 4  ;;  %p1674_p8 = scmp.ne.s32.totalorder %s2190_s3, %s1673_s19  ;;  %s59_s16 = int_to_ptr.vmem [resolvable:$true] %s58_s16 }
  0x17   :  { %p1677_p9 = scmp.lt.u32.totalorder %s1673_s19, %s2190_s3 }
  0x19   :  { %p1679_p10 = pnand %p1677_p9, %p1674_p8 }
  0x1b   :  { %1682 = shalt.err (!%p1679_p10)
}
  0x1c   :  { %s1683_s24 = scalar_lea.vmem %s59_s16, 8192  ;;  %p1688_p12 = scmp.lt.s32.totalorder %s59_s16, %s59_s16 }
  0x1d   :  { %p1684_p11 = scmp.ne.s32.totalorder %s59_s16, %s1683_s24  ;;  %p1689_p13 = scmp.lt.s32.totalorder %s1683_s24, %s1683_s24 }
  0x1f   :  { %p1690_p0 = por %p1689_p13, %p1688_p12 }
  0x21   :  { %p1691_p1 = pnand %p1690_p0, %p1684_p11 }
  0x23   :  { %1694 = shalt.err (!%p1691_p1)
}
  0x24   :  { %s1841_s1 = smov 256   ;;  %s1842_s25 = smov 16  }
  0x25   :  { %64 = dma.hbm_to_vmem [thread:$0]  %s2190_s3, 8192, %s59_s16, [#allocation9], %s1841_s1, %s1841_s1, %s1842_s25  }
  0x26   :  { %s1843_s28 = smov [#allocation11]   ;;  %s1844_s30 = smov [#allocation2]  }
  0x27   :  { %s82_s29 = sshll.u32 %s1843_s28, 4  ;;  %s22_s8 = sshll.u32 %s1844_s30, 4  ;;  %s83_s29 = int_to_ptr.vmem [resolvable:$true] %s82_s29  ;;  %s1922_s8 = int_to_ptr.vmem [resolvable:$true] %s22_s8 }
  0x28   :  { %s1695_s13 = scalar_lea.hbm %s2192_s5, 2048 }
  0x29   :  { %p1696_p2 = scmp.ne.s32.totalorder %s2192_s5, %s1695_s13  ;;  %p1699_p3 = scmp.lt.u32.totalorder %s1695_s13, %s2192_s5 }
  0x2b   :  { %p1701_p4 = pnand %p1699_p3, %p1696_p2 }
  0x2d   :  { %1704 = shalt.err (!%p1701_p4)
}
  0x2e   :  { %s1705_s3 = scalar_lea.vmem %s83_s29, 2048  ;;  %p1710_p6 = scmp.lt.s32.totalorder %s83_s29, %s83_s29 }
  0x2f   :  { %p1706_p5 = scmp.ne.s32.totalorder %s83_s29, %s1705_s3  ;;  %p1711_p7 = scmp.lt.s32.totalorder %s1705_s3, %s1705_s3 }
  0x31   :  { %p1712_p8 = por %p1711_p7, %p1710_p6 }
  0x33   :  { %p1713_p9 = pnand %p1712_p8, %p1706_p5 }
  0x35   :  { %1716 = shalt.err (!%p1713_p9)
}
  0x36   :  { %s1845_s16 = smov 128   ;;  %s1846_s19 = smov 8  }
  0x37   :  { %88 = dma.hbm_to_vmem [thread:$0]  %s2192_s5, 2048, %s83_s29, [#allocation12], %s1845_s16, %s1845_s16, %s1846_s19  }
  0x38   :  { %s1717_s24 = scalar_lea.hbm %s2187_s0, 256 }
  0x39   :  { %p1718_p10 = scmp.ne.s32.totalorder %s2187_s0, %s1717_s24  ;;  %p1721_p11 = scmp.lt.u32.totalorder %s1717_s24, %s2187_s0 }
  0x3b   :  { %p1723_p12 = pnand %p1721_p11, %p1718_p10 }
  0x3d   :  { %1726 = shalt.err (!%p1723_p12)
}
  0x3e   :  { %s1727_s9 = scalar_lea.vmem %s1922_s8, 256  ;;  %p1732_p0 = scmp.lt.s32.totalorder %s1922_s8, %s1922_s8 }
  0x3f   :  { %p1728_p13 = scmp.ne.s32.totalorder %s1922_s8, %s1727_s9  ;;  %p1733_p1 = scmp.lt.s32.totalorder %s1727_s9, %s1727_s9 }
  0x41   :  { %p1734_p2 = por %p1733_p1, %p1732_p0 }
  0x43   :  { %p1735_p3 = pnand %p1734_p2, %p1728_p13 }
  0x45   :  { %1738 = shalt.err (!%p1735_p3)
}
  0x46   :  { %28 = dma.hbm_to_vmem [thread:$0]  %s2187_s0, 256, %s1922_s8, [#allocation3], %s1845_s16, %s1845_s16, %s1846_s19  }
  0x47   :  { %s1847_s10 = smov [#allocation7]   ;;  %s1848_s14 = smov [#allocation10]  }
  0x48   :  { %s46_s13 = sshll.u32 %s1847_s10, 4  ;;  %s70_s15 = sshll.u32 %s1848_s14, 4  ;;  %s47_s13 = int_to_ptr.vmem [resolvable:$true] %s46_s13  ;;  %s1959_s15 = int_to_ptr.vmem [resolvable:$true] %s70_s15 }
  0x49   :  { %s1739_s3 = scalar_lea.hbm %s2189_s2, 12288 }
  0x4a   :  { %p1740_p4 = scmp.ne.s32.totalorder %s2189_s2, %s1739_s3  ;;  %p1743_p5 = scmp.lt.u32.totalorder %s1739_s3, %s2189_s2 }
  0x4c   :  { %p1745_p6 = pnand %p1743_p5, %p1740_p4 }
  0x4e   :  { %1748 = shalt.err (!%p1745_p6)
}
  0x4f   :  { %s1749_s0 = scalar_lea.vmem %s47_s13, 12288  ;;  %p1754_p8 = scmp.lt.s32.totalorder %s47_s13, %s47_s13 }
  0x50   :  { %p1750_p7 = scmp.ne.s32.totalorder %s47_s13, %s1749_s0  ;;  %p1755_p9 = scmp.lt.s32.totalorder %s1749_s0, %s1749_s0 }
  0x52   :  { %p1756_p10 = por %p1755_p9, %p1754_p8 }
  0x54   :  { %p1757_p11 = pnand %p1756_p10, %p1750_p7 }
  0x56   :  { %1760 = shalt.err (!%p1757_p11)
}
  0x57   :  { %52 = dma.hbm_to_vmem [thread:$0]  %s2189_s2, 12288, %s47_s13, [#allocation6], %s1841_s1, %s1841_s1, %s1842_s25  }
  0x58   :  { %s1761_s28 = scalar_lea.hbm %s2191_s4, 4096 }
  0x59   :  { %p1762_p12 = scmp.ne.s32.totalorder %s2191_s4, %s1761_s28  ;;  %p1765_p13 = scmp.lt.u32.totalorder %s1761_s28, %s2191_s4 }
  0x5b   :  { %p1767_p0 = pnand %p1765_p13, %p1762_p12 }
  0x5d   :  { %1770 = shalt.err (!%p1767_p0)
}
  0x5e   :  { %s1771_s10 = scalar_lea.vmem %s1959_s15, 4096  ;;  %p1776_p2 = scmp.lt.s32.totalorder %s1959_s15, %s1959_s15 }
  0x5f   :  { %p1772_p1 = scmp.ne.s32.totalorder %s1959_s15, %s1771_s10  ;;  %p1777_p3 = scmp.lt.s32.totalorder %s1771_s10, %s1771_s10 }
  0x61   :  { %p1778_p4 = por %p1777_p3, %p1776_p2 }
  0x63   :  { %p1779_p5 = pnand %p1778_p4, %p1772_p1 }
  0x65   :  { %1782 = shalt.err (!%p1779_p5)
}
  0x66   :  { %76 = dma.hbm_to_vmem [thread:$0]  %s2191_s4, 4096, %s1959_s15, [#allocation9], %s1845_s16, %s1845_s16, %s1846_s19  }
  0x67   :  { %s1849_s25 = smov [#allocation13]   ;;  %s1783_s18 = scalar_lea.hbm %s2193_s6, 1920 }
  0x68   :  { %s94_s13 = sshll.u32 %s1849_s25, 4  ;;  %p1784_p6 = scmp.ne.s32.totalorder %s2193_s6, %s1783_s18  ;;  %s95_s13 = int_to_ptr.vmem [resolvable:$true] %s94_s13 }
  0x69   :  { %p1787_p7 = scmp.lt.u32.totalorder %s1783_s18, %s2193_s6 }
  0x6b   :  { %p1789_p8 = pnand %p1787_p7, %p1784_p6 }
  0x6d   :  { %1792 = shalt.err (!%p1789_p8)
}
  0x6e   :  { %s1793_s23 = scalar_lea.vmem %s95_s13, 1920  ;;  %p1798_p10 = scmp.lt.s32.totalorder %s95_s13, %s95_s13 }
  0x6f   :  { %p1794_p9 = scmp.ne.s32.totalorder %s95_s13, %s1793_s23  ;;  %p1799_p11 = scmp.lt.s32.totalorder %s1793_s23, %s1793_s23 }
  0x71   :  { %p1800_p12 = por %p1799_p11, %p1798_p10 }
  0x73   :  { %p1801_p13 = pnand %p1800_p12, %p1794_p9 }
  0x75   :  { %1804 = shalt.err (!%p1801_p13)
}
  0x76   :  { %100 = dma.hbm_to_vmem [thread:$0]  %s2193_s6, 1920, %s95_s13, [#allocation12], %s1838_s11, %s1838_s11, %s1839_s12  }
  0x77   :  { %1827 = dma.done.wait [#allocation3], 256  }
  0x78   :  { %1828 = vsyncadd [#allocation3], 4294967040 }
  0x79   :  { %1829 = dma.done.wait [#allocation6], 13824  }
  0x7a   :  { %1830 = vsyncadd [#allocation6], 4294953472 }
  0x7b   :  { %1831 = dma.done.wait [#allocation9], 12288  }
  0x7c   :  { %1832 = vsyncadd [#allocation9], 4294955008 }
  0x7d   :  { %1833 = dma.done.wait [#allocation12], 3968  }
  0x7e   :  { %1834 = vsyncadd [#allocation12], 4294963328  ;;  %v1850_v0 = vmov 0.0   ;;  %v125_v1 = vld [vmem:[#allocation5 + $0x8] sm:$0xff]  ;;  %v128_v2 = vld [vmem:[#allocation5 + $0x20] sm:$0xff]  ;;  %vm157_vm0 = vcmask 261120  }
  0x7f   :  { %228 = vmatprep.mubr.f32.mxu1 %v1850_v0  ;;  %v124_v3 = vld [vmem:[#allocation5] sm:$0xff]  ;;  %v1372_v4 = vpack.c.bf16 %v128_v2, %v125_v1  ;;  %v127_v5 = vld [vmem:[#allocation5 + $0x18] sm:$0xff]  ;;  %v134_v7 = vld [vmem:[#allocation5 + $0x50] sm:$0xff]  ;;  %s1851_s6 = smov [#allocation14]  }
  0x80   :  { %v131_v6 = vld [vmem:[#allocation5 + $0x38] sm:$0xff]  ;;  %v1374_v8 = vpack.c.bf16 %v127_v5, %v124_v3  ;;  %v130_v10 = vld [vmem:[#allocation5 + $0x30] sm:$0xff]  ;;  %v133_v11 = vld [vmem:[#allocation5 + $0x48] sm:$0xff]  ;;  %s1245_s11 = sshll.u32 %s1851_s6, 4  ;;  %s1246_s11 = int_to_ptr.vmem [resolvable:$true] %s1245_s11 }
  0x81   :  { %v1376_v9 = vpack.c.bf16 %v134_v7, %v131_v6  ;;  %1373 = vmatprep.subr.bf16.mxu1 %v1372_v4  ;;  %v126_v12 = vld [vmem:[#allocation5 + $0x10] sm:$0xff]  ;;  %v129_v13 = vld [vmem:[#allocation5 + $0x28] sm:$0xff]  ;;  %v1378_v14 = vpack.c.bf16 %v133_v11, %v130_v10  ;;  %v132_v16 = vld [vmem:[#allocation5 + $0x40] sm:$0xff]  ;;  %v142_v6 = vlaneseq  ;;  %s1805_s12 = scalar_lea.vmem %s1246_s11, 256  ;;  %p1810_p1 = scmp.lt.s32.totalorder %s1246_s11, %s1246_s11 }
  0x82   :  { %1375 = vmatpush1.bf16.msra.mxu1 %v1374_v8  ;;  %v1380_v15 = vpack.c.bf16 %v129_v13, %v126_v12  ;;  %v135_v17 = vld [vmem:[#allocation5 + $0x58] sm:$0xff]  ;;  %v122_v18 = vld [vmem:[#allocation2] sm:$0xff]  ;;  %v422_v21 = vld [vmem:[#allocation7 + $0x8] sm:$0xff]  ;;  %p1806_p0 = scmp.ne.s32.totalorder %s1246_s11, %s1805_s12  ;;  %p1811_p2 = scmp.lt.s32.totalorder %s1805_s12, %s1805_s12 }
  0x83   :  { %1377 = vmatprep.subr.bf16.mxu1 %v1376_v9  ;;  %v1384_v19 = vpack.c.bf16 %v135_v17, %v132_v16  ;;  %v123_v20 = vld [vmem:[#allocation2 + $0x8] sm:$0xff]  ;;  %v421_v23 = vld [vmem:[#allocation7] sm:$0xff]  ;;  %v423_v25 = vld [vmem:[#allocation7 + $0x10] sm:$0xff]  ;;  %v143_v7 = vshrl.u32 %v142_v6, 7 }
  0x84   :  { %v424_v22 = vld [vmem:[#allocation7 + $0x18] sm:$0xff]  ;;  %v426_v26 = vld [vmem:[#allocation7 + $0x28] sm:$0xff]  ;;  %v1390_v28 = vpack.c.bf16 %v423_v25, %v421_v23  ;;  %v425_v30 = vld [vmem:[#allocation7 + $0x20] sm:$0xff]  ;;  %p1812_p3 = por %p1811_p2, %p1810_p1 }
  0x85   :  { %v1388_v24 = vpack.c.bf16 %v424_v22, %v422_v21  ;;  %v428_v27 = vld [vmem:[#allocation7 + $0x38] sm:$0xff]  ;;  %v427_v31 = vld [vmem:[#allocation7 + $0x30] sm:$0xff]  ;;  %v430_v32 = vld [vmem:[#allocation7 + $0x48] sm:$0xff]  ;;  %v2013_v8 = vsub.s32 0, %v143_v7  ;;  %v2015_v9 = vsub.s32 1, %v143_v7  ;;  %v2017_v13 = vsub.s32 2, %v143_v7 }
  0x86   :  { %1379 = vmatpush1.bf16.msra.mxu1 %v1378_v14  ;;  %v1392_v29 = vpack.c.bf16 %v428_v27, %v426_v26  ;;  %v432_v33 = vld [vmem:[#allocation7 + $0x58] sm:$0xff]  ;;  %v1394_v34 = vpack.c.bf16 %v427_v31, %v425_v30  ;;  %v429_v36 = vld [vmem:[#allocation7 + $0x40] sm:$0xff]  ;;  %v431_v37 = vld [vmem:[#allocation7 + $0x50] sm:$0xff]  ;;  %p1813_p4 = pnand %p1812_p3, %p1806_p0 }
  0x87   :  { %1381 = vmatprep.subr.bf16.mxu1 %v1380_v15  ;;  %1389 = vmatprep.subr.bf16.mxu0 %v1388_v24  ;;  %v1396_v35 = vpack.c.bf16 %v432_v33, %v430_v32  ;;  %v434_v38 = vld [vmem:[#allocation7 + $0x68] sm:$0xff]  ;;  %v436_v39 = vld [vmem:[#allocation7 + $0x78] sm:$0xff]  ;;  %v1398_v40 = vpack.c.bf16 %v431_v37, %v429_v36  ;;  %v433_v42 = vld [vmem:[#allocation7 + $0x60] sm:$0xff] }
  0x88   :  { %1391 = vmatpush1.bf16.msra.mxu0 %v1390_v28  ;;  %v1400_v41 = vpack.c.bf16 %v436_v39, %v434_v38  ;;  %v435_v43 = vld [vmem:[#allocation7 + $0x70] sm:$0xff]  ;;  %v438_v44 = vld [vmem:[#allocation7 + $0x88] sm:$0xff]  ;;  %v440_v45 = vld [vmem:[#allocation7 + $0x98] sm:$0xff] }
  0x89   :  { %1260 = vmatmul.mubr.msk.f32.vlgmr.msra.gmra.mrb[0].mxu1 %vm157_vm0, %v122_v18  ;;  %1393 = vmatprep.subr.bf16.mxu0 %v1392_v29  ;;  %v1402_v46 = vpack.c.bf16 %v435_v43, %v433_v42  ;;  %v1404_v47 = vpack.c.bf16 %v440_v45, %v438_v44  ;;  %v437_v48 = vld [vmem:[#allocation7 + $0x80] sm:$0xff]  ;;  %v439_v49 = vld [vmem:[#allocation7 + $0x90] sm:$0xff]  ;;  %v442_v50 = vld [vmem:[#allocation7 + $0xa8] sm:$0xff] }
  0x8a   :  { %1383 = vmatpush3.bf16.msra.mxu1 %v1380_v15  ;;  %234 = vmatprep.mubr.f32.mxu1 %v1850_v0  ;;  %v444_v51 = vld [vmem:[#allocation7 + $0xb8] sm:$0xff]  ;;  %v1406_v52 = vpack.c.bf16 %v439_v49, %v437_v48  ;;  %v441_v54 = vld [vmem:[#allocation7 + $0xa0] sm:$0xff]  ;;  %v443_v55 = vld [vmem:[#allocation7 + $0xb0] sm:$0xff] }
  0x8b   :  { %1385 = vmatprep.subr.bf16.mxu1 %v1384_v19  ;;  %v1408_v53 = vpack.c.bf16 %v444_v51, %v442_v50  ;;  %v446_v56 = vld [vmem:[#allocation7 + $0xc8] sm:$0xff]  ;;  %v448_v57 = vld [vmem:[#allocation7 + $0xd8] sm:$0xff]  ;;  %v1410_v58 = vpack.c.bf16 %v443_v55, %v441_v54  ;;  %v445_v60 = vld [vmem:[#allocation7 + $0xc0] sm:$0xff] }
  0x8c   :  { %1395 = vmatpush1.bf16.msra.mxu0 %v1394_v34  ;;  %v1412_v59 = vpack.c.bf16 %v448_v57, %v446_v56  ;;  %v447_v61 = vld [vmem:[#allocation7 + $0xd0] sm:$0xff]  ;;  %v450_v62 = vld [vmem:[#allocation7 + $0xe8] sm:$0xff]  ;;  %v452_v63 = vld [vmem:[#allocation7 + $0xf8] sm:$0xff] }
  0x8d   :  { %1261 = vmatmul.mubr.msk.f32.gmra.mrb[2].mxu1 %vm157_vm0, %v123_v20  ;;  %1397 = vmatprep.subr.bf16.mxu0 %v1396_v35  ;;  %v1414_v1 = vpack.c.bf16 %v447_v61, %v445_v60  ;;  %v1416_v2 = vpack.c.bf16 %v452_v63, %v450_v62  ;;  %v449_v3 = vld [vmem:[#allocation7 + $0xe0] sm:$0xff]  ;;  %v451_v4 = vld [vmem:[#allocation7 + $0xf0] sm:$0xff]  ;;  %v456_v42 = vld [vmem:[#allocation7 + $0x118] sm:$0xff] }
  0x8e   :  { %1387 = vmatpush3.bf16.msra.mxu1 %v1384_v19  ;;  %1334 = vmatprep.mubr.msk.f32.mxu1 %vm157_vm0, %v122_v18  ;;  %v1418_v5 = vpack.c.bf16 %v451_v4, %v449_v3  ;;  %v136_v10 = vld [vmem:[#allocation13] ss:$8 sm:$0x7]  ;;  %v460_v48 = vld [vmem:[#allocation7 + $0x138] sm:$0xff] }
  0x8f   :  { %v145_v14 = vrot.slane %v136_v10, %v2013_v8  ;;  %v149_v15 = vrot.slane %v136_v10, %v2015_v9  ;;  %v153_v19 = vrot.slane %v136_v10, %v2017_v13  ;;  %v453_v44 = vld [vmem:[#allocation7 + $0x100] sm:$0xff]  ;;  %v455_v45 = vld [vmem:[#allocation7 + $0x110] sm:$0xff]  ;;  %v464_v54 = vld [vmem:[#allocation7 + $0x158] sm:$0xff] }
  0x90   :  { %1399 = vmatpush1.bf16.msra.mxu0 %v1398_v40  ;;  %v457_v50 = vld [vmem:[#allocation7 + $0x120] sm:$0xff]  ;;  %v459_v51 = vld [vmem:[#allocation7 + $0x130] sm:$0xff]  ;;  %v468_v60 = vld [vmem:[#allocation7 + $0x178] sm:$0xff] }
  0x91   :  { %1335 = vmatmul.mubr.msk.f32.vlgmr.msra.gmra.mrb[4].mxu1 %vm157_vm0, %v123_v20  ;;  %1401 = vmatprep.subr.bf16.mxu0 %v1400_v41  ;;  %v454_v41 = vld [vmem:[#allocation7 + $0x108] sm:$0xff]  ;;  %v461_v56 = vld [vmem:[#allocation7 + $0x140] sm:$0xff]  ;;  %v463_v57 = vld [vmem:[#allocation7 + $0x150] sm:$0xff] }
  0x92   :  { %v1420_v43 = vpack.c.bf16 %v456_v42, %v454_v41  ;;  %v465_v62 = vld [vmem:[#allocation7 + $0x160] sm:$0xff]  ;;  %v467_v63 = vld [vmem:[#allocation7 + $0x170] sm:$0xff]  ;;  %v472_v3 = vld [vmem:[#allocation7 + $0x198] sm:$0xff] }
  0x93   :  { %v469_v4 = vld [vmem:[#allocation7 + $0x180] sm:$0xff]  ;;  %v471_v6 = vld [vmem:[#allocation7 + $0x190] sm:$0xff]  ;;  %v474_v7 = vld [vmem:[#allocation7 + $0x1a8] sm:$0xff] }
  0x94   :  { %1403 = vmatpush1.bf16.msra.mxu0 %v1402_v46  ;;  %v1422_v46 = vpack.c.bf16 %v455_v45, %v453_v44  ;;  %v476_v10 = vld [vmem:[#allocation7 + $0x1b8] sm:$0xff] }
  0x95   :  { %1405 = vmatprep.subr.bf16.mxu0 %v1404_v47  ;;  %v458_v47 = vld [vmem:[#allocation7 + $0x128] sm:$0xff] }
  0x96   :  { %v1424_v49 = vpack.c.bf16 %v460_v48, %v458_v47 }
  0x98   :  { %1407 = vmatpush1.bf16.msra.mxu0 %v1406_v52  ;;  %v1426_v52 = vpack.c.bf16 %v459_v51, %v457_v50 }
  0x99   :  { %1409 = vmatprep.subr.bf16.mxu0 %v1408_v53  ;;  %v462_v53 = vld [vmem:[#allocation7 + $0x148] sm:$0xff] }
  0x9a   :  { %v1428_v55 = vpack.c.bf16 %v464_v54, %v462_v53  ;;  %v2060_v54 = vld [vmem:[#allocation13 + $0x1] ss:$8 sm:$0x7] }
  0x9c   :  { %1411 = vmatpush1.bf16.msra.mxu0 %v1410_v58  ;;  %v1430_v58 = vpack.c.bf16 %v463_v57, %v461_v56 }
  0x9d   :  { %1413 = vmatprep.subr.bf16.mxu0 %v1412_v59  ;;  %v466_v59 = vld [vmem:[#allocation7 + $0x168] sm:$0xff] }
  0x9e   :  { %v1432_v61 = vpack.c.bf16 %v468_v60, %v466_v59  ;;  %v369_v59 = vrot.slane %v2060_v54, %v2013_v8 }
  0xa0   :  { %1415 = vmatpush1.bf16.msra.mxu0 %v1414_v1  ;;  %v1434_v1 = vpack.c.bf16 %v467_v63, %v465_v62 }
  0xa1   :  { %1417 = vmatprep.subr.bf16.mxu0 %v1416_v2  ;;  %v470_v2 = vld [vmem:[#allocation7 + $0x188] sm:$0xff] }
  0xa4   :  { %1419 = vmatpush1.bf16.msra.mxu0 %v1418_v5  ;;  %v1436_v5 = vpack.c.bf16 %v472_v3, %v470_v2 }
  0xa5   :  { %1421 = vmatprep.subr.bf16.mxu0 %v1420_v43 }
  0xa8   :  { %1423 = vmatpush1.bf16.msra.mxu0 %v1422_v46 }
  0xa9   :  { %1425 = vmatprep.subr.bf16.mxu0 %v1424_v49 }
  0xac   :  { %1427 = vmatpush1.bf16.msra.mxu0 %v1426_v52 }
  0xad   :  { %1429 = vmatprep.subr.bf16.mxu0 %v1428_v55  ;;  %v2062_v55 = vld [vmem:[#allocation13 + $0x2] ss:$8 sm:$0x7] }
  0xb0   :  { %1431 = vmatpush1.bf16.msra.mxu0 %v1430_v58  ;;  %v373_v58 = vrot.slane %v2060_v54, %v2015_v9 }
  0xb1   :  { %1433 = vmatprep.subr.bf16.mxu0 %v1432_v61 }
  0xb4   :  { %1435 = vmatpush1.bf16.msra.mxu0 %v1434_v1 }
  0xb5   :  { %1437 = vmatprep.subr.bf16.mxu0 %v1436_v5 }
 0x15c   :  { %v230_v11 = vpop.f32.mrb[0].mxu1 }
 0x15d   :  { %v232_v12 = vpop.f32.mrb[1].mxu1  ;;  %v2024_v20 = vadd.f32 %v230_v11, %v145_v14  ;;  %v1438_v11 = vpack.c.bf16 %v471_v6, %v469_v4  ;;  %v391_v4 = vrot.slane %v2062_v55, %v2013_v8 }
 0x15e   :  { %v2026_v21 = vadd.f32 %v232_v12, %v149_v15  ;;  %v1440_v12 = vpack.c.bf16 %v476_v10, %v474_v7 }
 0x15f   :  { %v327_v29 = vmul.f32 %v2024_v20, %v2024_v20  ;;  %1439 = vmatpush1.bf16.msra.mxu0 %v1438_v11 }
 0x160   :  { %v236_v16 = vpop.f32.mrb[2].mxu1  ;;  %v328_v30 = vmul.f32 %v2026_v21, %v2026_v21  ;;  %v316_v32 = vadd.f32 %v2026_v21, %v2024_v20  ;;  %1441 = vmatprep.subr.bf16.mxu0 %v1440_v12  ;;  %v485_v12 = vld [vmem:[#allocation7 + $0x200] sm:$0xff] }
 0x161   :  { %v2021_v17 = vadd.f32 %v236_v16, %v145_v14  ;;  %v238_v18 = vpop.f32.mrb[3].mxu1  ;;  %v473_v14 = vld [vmem:[#allocation7 + $0x1a0] sm:$0xff]  ;;  %v478_v16 = vld [vmem:[#allocation7 + $0x1c8] sm:$0xff] }
 0x162   :  { %v2028_v22 = vadd.f32 %v238_v18, %v149_v15  ;;  %v333_v38 = vadd.f32 %v328_v30, %v327_v29  ;;  %v475_v15 = vld [vmem:[#allocation7 + $0x1b0] sm:$0xff]  ;;  %v480_v18 = vld [vmem:[#allocation7 + $0x1d8] sm:$0xff] }
 0x163   :  { %v330_v23 = vmul.f32 %v2021_v17, %v2021_v17 }
 0x164   :  { %v331_v24 = vmul.f32 %v2028_v22, %v2028_v22  ;;  %v1336_v25 = vpop.f32.mrb[4].mxu1  ;;  %v320_v26 = vadd.f32 %v2028_v22, %v2021_v17 }
 0x165   :  { %v2036_v27 = vadd.f32 %v1336_v25, %v153_v19  ;;  %v307_v28 = vpop.f32.mrb[5].mxu1  ;;  %v479_v25 = vld [vmem:[#allocation7 + $0x1d0] sm:$0xff] }
 0x166   :  { %v2042_v31 = vadd.f32 %v307_v28, %v153_v19  ;;  %v337_v35 = vadd.f32 %v331_v24, %v330_v23  ;;  %v1442_v19 = vpack.c.bf16 %v475_v15, %v473_v14  ;;  %v1444_v23 = vpack.c.bf16 %v480_v18, %v478_v16  ;;  %v477_v24 = vld [vmem:[#allocation7 + $0x1c0] sm:$0xff]  ;;  %v484_v28 = vld [vmem:[#allocation7 + $0x1f8] sm:$0xff]  ;;  %v487_v14 = vld [vmem:[#allocation7 + $0x210] sm:$0xff] }
 0x167   :  { %v321_v33 = vadd.f32 %v320_v26, %v2036_v27  ;;  %v332_v34 = vmul.f32 %v2036_v27, %v2036_v27  ;;  %v482_v26 = vld [vmem:[#allocation7 + $0x1e8] sm:$0xff]  ;;  %v1446_v29 = vpack.c.bf16 %v479_v25, %v477_v24  ;;  %v492_v16 = vld [vmem:[#allocation7 + $0x238] sm:$0xff] }
 0x168   :  { %v317_v36 = vadd.f32 %v316_v32, %v2042_v31  ;;  %v329_v37 = vmul.f32 %v2042_v31, %v2042_v31  ;;  %1443 = vmatpush1.bf16.msra.mxu0 %v1442_v19  ;;  %v1448_v30 = vpack.c.bf16 %v484_v28, %v482_v26  ;;  %v481_v32 = vld [vmem:[#allocation7 + $0x1e0] sm:$0xff]  ;;  %v490_v15 = vld [vmem:[#allocation7 + $0x228] sm:$0xff]  ;;  %v1454_v28 = vpack.c.bf16 %v487_v14, %v485_v12 }
 0x169   :  { %322 = vadd.xlane.f32.xlu1 %v321_v33  ;;  %v338_v39 = vadd.f32 %v337_v35, %v332_v34  ;;  %1445 = vmatprep.subr.bf16.mxu0 %v1444_v23  ;;  %v483_v33 = vld [vmem:[#allocation7 + $0x1f0] sm:$0xff]  ;;  %v486_v35 = vld [vmem:[#allocation7 + $0x208] sm:$0xff] }
 0x16a   :  { %318 = vadd.xlane.f32.xlu0 %v317_v36  ;;  %v334_v40 = vadd.f32 %v333_v38, %v329_v37  ;;  %v1450_v34 = vpack.c.bf16 %v483_v33, %v481_v32  ;;  %v488_v36 = vld [vmem:[#allocation7 + $0x218] sm:$0xff]  ;;  %v489_v32 = vld [vmem:[#allocation7 + $0x220] sm:$0xff]  ;;  %v491_v33 = vld [vmem:[#allocation7 + $0x230] sm:$0xff] }
 0x16b   :  { %v1452_v37 = vpack.c.bf16 %v488_v36, %v486_v35  ;;  %v494_v35 = vld [vmem:[#allocation7 + $0x248] sm:$0xff]  ;;  %v496_v36 = vld [vmem:[#allocation7 + $0x258] sm:$0xff] }
 0x16c   :  { %1447 = vmatpush1.bf16.msra.mxu0 %v1446_v29  ;;  %v1456_v29 = vpack.c.bf16 %v492_v16, %v490_v15 }
 0x16d   :  { %339 = vadd.xlane.f32.xlu1 %v338_v39  ;;  %1449 = vmatprep.subr.bf16.mxu0 %v1448_v30 }
 0x16e   :  { %335 = vadd.xlane.f32.xlu0 %v334_v40 }
 0x170   :  { %1451 = vmatpush1.bf16.msra.mxu0 %v1450_v34 }
 0x171   :  { %1453 = vmatprep.subr.bf16.mxu0 %v1452_v37  ;;  %v1458_v37 = vpack.c.bf16 %v491_v33, %v489_v32  ;;  %v772_v32 = vld [vmem:[#allocation8 + $0x38] sm:$0xff] }
 0x1f6   :  { %v323_v38 = vpop.xlane.xlu1 %322 }
 0x1f7   :  { %v2052_v39 = vmul.f32 0.0026041667, %v323_v38  ;;  %v319_v40 = vpop.xlane.xlu0 %318 }
 0x1f8   :  { %v2054_v41 = vmul.f32 0.0026041667, %v319_v40  ;;  %v1460_v40 = vpack.c.bf16 %v496_v36, %v494_v35  ;;  %v769_v35 = vld [vmem:[#allocation8 + $0x20] sm:$0xff]  ;;  %v771_v36 = vld [vmem:[#allocation8 + $0x30] sm:$0xff] }
 0x1f9   :  { %v344_v43 = vmul.f32 %v2052_v39, %v2052_v39  ;;  %v352_v56 = vsub.f32 %v2021_v17, %v2052_v39  ;;  %v353_v57 = vsub.f32 %v2028_v22, %v2052_v39  ;;  %v395_v17 = vrot.slane %v2062_v55, %v2015_v9 }
 0x1fa   :  { %v340_v42 = vpop.xlane.xlu1 %339  ;;  %v343_v46 = vmul.f32 %v2054_v41, %v2054_v41  ;;  %v349_v61 = vsub.f32 %v2024_v20, %v2054_v41  ;;  %v350_v62 = vsub.f32 %v2026_v21, %v2054_v41 }
 0x1fb   :  { %v342_v44 = vmul.f32 0.0026041667, %v340_v42  ;;  %v336_v45 = vpop.xlane.xlu0 %335  ;;  %v493_v42 = vld [vmem:[#allocation7 + $0x240] sm:$0xff] }
 0x1fc   :  { %v341_v47 = vmul.f32 0.0026041667, %v336_v45  ;;  %v500_v45 = vld [vmem:[#allocation7 + $0x278] sm:$0xff] }
 0x1fd   :  { %v346_v48 = vsub.f32 %v342_v44, %v344_v43  ;;  %v495_v43 = vld [vmem:[#allocation7 + $0x250] sm:$0xff]  ;;  %v498_v44 = vld [vmem:[#allocation7 + $0x268] sm:$0xff] }
 0x1fe   :  { %v345_v49 = vsub.f32 %v341_v47, %v343_v46  ;;  %v1462_v46 = vpack.c.bf16 %v495_v43, %v493_v42  ;;  %v1464_v47 = vpack.c.bf16 %v500_v45, %v498_v44  ;;  %v773_v42 = vld [vmem:[#allocation8 + $0x40] sm:$0xff]  ;;  %v775_v43 = vld [vmem:[#allocation8 + $0x50] sm:$0xff]  ;;  %v778_v44 = vld [vmem:[#allocation8 + $0x68] sm:$0xff] }
 0x1ff   :  { %v348_v50 = vmax.f32 %v346_v48, 0.0  ;;  %v497_v48 = vld [vmem:[#allocation7 + $0x260] sm:$0xff]  ;;  %v780_v45 = vld [vmem:[#allocation8 + $0x78] sm:$0xff] }
 0x200   :  { %v347_v51 = vmax.f32 %v345_v49, 0.0  ;;  %v499_v49 = vld [vmem:[#allocation7 + $0x270] sm:$0xff] }
 0x201   :  { %v356_v52 = vadd.f32 1e-05, %v348_v50  ;;  %v502_v50 = vld [vmem:[#allocation7 + $0x288] sm:$0xff] }
 0x202   :  { %v355_v53 = vadd.f32 1e-05, %v347_v51  ;;  %v504_v51 = vld [vmem:[#allocation7 + $0x298] sm:$0xff] }
 0x203   :  { %1635 = vrsqrt.f32 %v356_v52  ;;  %v1466_v52 = vpack.c.bf16 %v499_v49, %v497_v48  ;;  %v777_v48 = vld [vmem:[#allocation8 + $0x60] sm:$0xff]  ;;  %v779_v49 = vld [vmem:[#allocation8 + $0x70] sm:$0xff] }
 0x204   :  { %1637 = vrsqrt.f32 %v355_v53  ;;  %v1468_v53 = vpack.c.bf16 %v504_v51, %v502_v50  ;;  %v782_v50 = vld [vmem:[#allocation8 + $0x88] sm:$0xff]  ;;  %v784_v51 = vld [vmem:[#allocation8 + $0x98] sm:$0xff] }
 0x20d   :  { %v2072_v60 = vpop.eup %1635 }
 0x20e   :  { %v2078_v63 = vpop.eup %1637  ;;  %v363_v22 = vmul.f32 %v2072_v60, %v353_v57  ;;  %v362_v1 = vmul.f32 %v2072_v60, %v352_v56  ;;  %v501_v56 = vld [vmem:[#allocation7 + $0x280] sm:$0xff]  ;;  %v503_v57 = vld [vmem:[#allocation7 + $0x290] sm:$0xff] }
 0x20f   :  { %v360_v2 = vmul.f32 %v2078_v63, %v350_v62  ;;  %v359_v3 = vmul.f32 %v2078_v63, %v349_v61  ;;  %v351_v61 = vsub.f32 %v2042_v31, %v2054_v41  ;;  %v1470_v62 = vpack.c.bf16 %v503_v57, %v501_v56  ;;  %v781_v56 = vld [vmem:[#allocation8 + $0x80] sm:$0xff]  ;;  %v783_v57 = vld [vmem:[#allocation8 + $0x90] sm:$0xff] }
 0x210   :  { %v385_v20 = vmul.f32 %v373_v58, %v363_v22  ;;  %v384_v5 = vmul.f32 %v369_v59, %v362_v1  ;;  %v377_v22 = vrot.slane %v2060_v54, %v2017_v13  ;;  %v399_v31 = vrot.slane %v2062_v55, %v2017_v13 }
 0x211   :  { %v382_v6 = vmul.f32 %v373_v58, %v360_v2  ;;  %v381_v21 = vmul.f32 %v369_v59, %v359_v3  ;;  %v506_v58 = vld [vmem:[#allocation7 + $0x2a8] sm:$0xff]  ;;  %v508_v59 = vld [vmem:[#allocation7 + $0x2b8] sm:$0xff]  ;;  %v505_v2 = vld [vmem:[#allocation7 + $0x2a0] sm:$0xff] }
 0x212   :  { %v407_v7 = vadd.f32 %v395_v17, %v385_v20  ;;  %v406_v18 = vadd.f32 %v391_v4, %v384_v5  ;;  %v1472_v1 = vpack.c.bf16 %v508_v59, %v506_v58  ;;  %v507_v3 = vld [vmem:[#allocation7 + $0x2b0] sm:$0xff]  ;;  %v512_v20 = vld [vmem:[#allocation7 + $0x2d8] sm:$0xff]  ;;  %v354_v5 = vsub.f32 %v2036_v27, %v2052_v39  ;;  %v513_v27 = vld [vmem:[#allocation7 + $0x2e0] sm:$0xff] }
 0x213   :  { %v404_v10 = vadd.f32 %v395_v17, %v382_v6  ;;  %v403_v11 = vadd.f32 %v391_v4, %v381_v21  ;;  %v361_v17 = vmul.f32 %v2078_v63, %v351_v61  ;;  %v510_v4 = vld [vmem:[#allocation7 + $0x2c8] sm:$0xff]  ;;  %v1474_v6 = vpack.c.bf16 %v507_v3, %v505_v2  ;;  %v509_v63 = vld [vmem:[#allocation7 + $0x2c0] sm:$0xff]  ;;  %v515_v39 = vld [vmem:[#allocation7 + $0x2f0] sm:$0xff] }
 0x214   :  { %v413_v24 = vmul.f32 0.1, %v407_v7  ;;  %v412_v30 = vmul.f32 0.1, %v406_v18  ;;  %v1476_v41 = vpack.c.bf16 %v512_v20, %v510_v4  ;;  %v364_v54 = vmul.f32 %v2072_v60, %v354_v5  ;;  %v786_v58 = vld [vmem:[#allocation8 + $0xa8] sm:$0xff]  ;;  %v788_v59 = vld [vmem:[#allocation8 + $0xb8] sm:$0xff] }
 0x215   :  { %v410_v19 = vmul.f32 0.1, %v404_v10  ;;  %v409_v23 = vmul.f32 0.1, %v403_v11  ;;  %v383_v21 = vmul.f32 %v377_v22, %v361_v17  ;;  %v1502_v61 = vpack.c.bf16 %v783_v57, %v781_v56  ;;  %v785_v17 = vld [vmem:[#allocation8 + $0xa0] sm:$0xff]  ;;  %v792_v2 = vld [vmem:[#allocation8 + $0xd8] sm:$0xff] }
 0x216   :  { %v419_v34 = vmax.f32 %v407_v7, %v413_v24  ;;  %v418_v38 = vmax.f32 %v406_v18, %v412_v30  ;;  %v511_v7 = vld [vmem:[#allocation7 + $0x2d0] sm:$0xff]  ;;  %v386_v16 = vmul.f32 %v377_v22, %v364_v54  ;;  %v1482_v18 = vpack.c.bf16 %v515_v39, %v513_v27  ;;  %v766_v24 = vld [vmem:[#allocation8 + $0x8] sm:$0xff]  ;;  %v789_v20 = vld [vmem:[#allocation8 + $0xc0] sm:$0xff] }
 0x217   :  { %v416_v25 = vmax.f32 %v404_v10, %v410_v19  ;;  %v415_v26 = vmax.f32 %v403_v11, %v409_v23  ;;  %v514_v10 = vld [vmem:[#allocation7 + $0x2e8] sm:$0xff]  ;;  %v516_v11 = vld [vmem:[#allocation7 + $0x2f8] sm:$0xff]  ;;  %v1478_v12 = vpack.c.bf16 %v511_v7, %v509_v63  ;;  %v405_v14 = vadd.f32 %v399_v31, %v383_v21  ;;  %v787_v22 = vld [vmem:[#allocation8 + $0xb0] sm:$0xff] }
 0x218   :  { %v1480_v15 = vpack.c.bf16 %v516_v11, %v514_v10  ;;  %v408_v13 = vadd.f32 %v399_v31, %v386_v16  ;;  %v770_v30 = vld [vmem:[#allocation8 + $0x28] sm:$0xff]  ;;  %v1506_v3 = vpack.c.bf16 %v787_v22, %v785_v17  ;;  %v791_v5 = vld [vmem:[#allocation8 + $0xd0] sm:$0xff]  ;;  %v796_v21 = vld [vmem:[#allocation8 + $0xf8] sm:$0xff] }
 0x219   :  { %598 = vmatprep.mubr.f32.mxu0 %v416_v25  ;;  %v411_v19 = vmul.f32 0.1, %v405_v14  ;;  %v768_v25 = vld [vmem:[#allocation8 + $0x18] sm:$0xff]  ;;  %v1510_v31 = vpack.c.bf16 %v791_v5, %v789_v20  ;;  %v793_v63 = vld [vmem:[#allocation8 + $0xe0] sm:$0xff]  ;;  %v795_v7 = vld [vmem:[#allocation8 + $0xf0] sm:$0xff] }
 0x21a   :  { %599 = vmatmul.mubr.f32.vlgmr.msra.gmra.mrb[0].mxu0 %v415_v26  ;;  %v414_v23 = vmul.f32 0.1, %v408_v13  ;;  %v765_v26 = vld [vmem:[#allocation8] sm:$0xff]  ;;  %v1514_v54 = vpack.c.bf16 %v795_v7, %v793_v63  ;;  %v811_v56 = vld [vmem:[#allocation8 + $0x170] sm:$0xff]  ;;  %v818_v22 = vld [vmem:[#allocation8 + $0x1a8] sm:$0xff] }
 0x21b   :  { %1455 = vmatpush1.bf16.msra.mxu0 %v1454_v28  ;;  %604 = vmatprep.mubr.f32.mxu0 %v419_v34  ;;  %v417_v55 = vmax.f32 %v405_v14, %v411_v19  ;;  %v1484_v28 = vpack.c.bf16 %v768_v25, %v766_v24  ;;  %v1488_v34 = vpack.c.bf16 %v772_v32, %v770_v30  ;;  %v518_v10 = vld [vmem:[#allocation13 + $0x18] ss:$8 sm:$0x3]  ;;  %v798_v30 = vld [vmem:[#allocation8 + $0x108] sm:$0xff]  ;;  %v815_v17 = vld [vmem:[#allocation8 + $0x190] sm:$0xff] }
 0x21c   :  { %1457 = vmatprep.subr.bf16.mxu0 %v1456_v29  ;;  %v420_v60 = vmax.f32 %v408_v13, %v414_v23  ;;  %v767_v29 = vld [vmem:[#allocation8 + $0x10] sm:$0xff]  ;;  %v527_v11 = vrot.slane %v518_v10, %v2013_v8  ;;  %v800_v32 = vld [vmem:[#allocation8 + $0x118] sm:$0xff]  ;;  %v822_v5 = vld [vmem:[#allocation8 + $0x1c8] sm:$0xff] }
 0x21d   :  { %v1486_v33 = vpack.c.bf16 %v767_v29, %v765_v26  ;;  %1485 = vmatprep.subr.bf16.mxu1 %v1484_v28  ;;  %v823_v63 = vld [vmem:[#allocation8 + $0x1d0] sm:$0xff]  ;;  %v826_v7 = vld [vmem:[#allocation8 + $0x1e8] sm:$0xff] }
 0x21e   :  { %605 = vmatmul.mubr.f32.gmra.mrb[2].mxu0 %v418_v38  ;;  %v776_v38 = vld [vmem:[#allocation8 + $0x58] sm:$0xff] }
 0x21f   :  { %1459 = vmatpush1.bf16.msra.mxu0 %v1458_v37  ;;  %675 = vmatprep.mubr.f32.mxu0 %v1850_v0  ;;  %v774_v37 = vld [vmem:[#allocation8 + $0x48] sm:$0xff] }
 0x220   :  { %1461 = vmatprep.subr.bf16.mxu0 %v1460_v40  ;;  %1487 = vmatpush1.bf16.msra.mxu1 %v1486_v33  ;;  %v1490_v40 = vpack.c.bf16 %v771_v36, %v769_v35  ;;  %v1516_v33 = vpack.c.bf16 %v800_v32, %v798_v30  ;;  %v799_v35 = vld [vmem:[#allocation8 + $0x110] sm:$0xff] }
 0x221   :  { %1489 = vmatprep.subr.bf16.mxu1 %v1488_v34  ;;  %v797_v34 = vld [vmem:[#allocation8 + $0x100] sm:$0xff] }
 0x222   :  { %v1518_v36 = vpack.c.bf16 %v799_v35, %v797_v34 }
 0x223   :  { %1463 = vmatpush1.bf16.msra.mxu0 %v1462_v46  ;;  %v1494_v46 = vpack.c.bf16 %v775_v43, %v773_v42  ;;  %v803_v42 = vld [vmem:[#allocation8 + $0x130] sm:$0xff] }
 0x224   :  { %1465 = vmatprep.subr.bf16.mxu0 %v1464_v47  ;;  %1491 = vmatpush1.bf16.msra.mxu1 %v1490_v40  ;;  %v1496_v47 = vpack.c.bf16 %v780_v45, %v778_v44  ;;  %v806_v44 = vld [vmem:[#allocation8 + $0x148] sm:$0xff]  ;;  %v808_v45 = vld [vmem:[#allocation8 + $0x158] sm:$0xff] }
 0x227   :  { %1467 = vmatpush1.bf16.msra.mxu0 %v1466_v52  ;;  %v1498_v52 = vpack.c.bf16 %v779_v49, %v777_v48  ;;  %v807_v48 = vld [vmem:[#allocation8 + $0x150] sm:$0xff] }
 0x228   :  { %1469 = vmatprep.subr.bf16.mxu0 %v1468_v53  ;;  %v1500_v53 = vpack.c.bf16 %v784_v51, %v782_v50  ;;  %v810_v50 = vld [vmem:[#allocation8 + $0x168] sm:$0xff]  ;;  %v812_v51 = vld [vmem:[#allocation8 + $0x178] sm:$0xff] }
 0x22b   :  { %1471 = vmatpush1.bf16.msra.mxu0 %v1470_v62  ;;  %v1504_v62 = vpack.c.bf16 %v788_v59, %v786_v58  ;;  %v814_v58 = vld [vmem:[#allocation8 + $0x188] sm:$0xff]  ;;  %v816_v59 = vld [vmem:[#allocation8 + $0x198] sm:$0xff] }
 0x22c   :  { %1473 = vmatprep.subr.bf16.mxu0 %v1472_v1  ;;  %v790_v1 = vld [vmem:[#allocation8 + $0xc8] sm:$0xff] }
 0x22d   :  { %v1508_v4 = vpack.c.bf16 %v792_v2, %v790_v1  ;;  %v820_v2 = vld [vmem:[#allocation8 + $0x1b8] sm:$0xff] }
 0x22e   :  { %v1536_v20 = vpack.c.bf16 %v820_v2, %v818_v22 }
 0x22f   :  { %1475 = vmatpush1.bf16.msra.mxu0 %v1474_v6  ;;  %v794_v6 = vld [vmem:[#allocation8 + $0xe8] sm:$0xff] }
 0x230   :  { %1477 = vmatprep.subr.bf16.mxu0 %v1476_v41  ;;  %v1512_v41 = vpack.c.bf16 %v796_v21, %v794_v6  ;;  %v824_v6 = vld [vmem:[#allocation8 + $0x1d8] sm:$0xff] }
 0x233   :  { %1479 = vmatpush1.bf16.msra.mxu0 %v1478_v12  ;;  %v531_v12 = vrot.slane %v518_v10, %v2015_v9 }
 0x234   :  { %1481 = vmatprep.subr.bf16.mxu0 %v1480_v15 }
 0x237   :  { %1483 = vmatpush1.bf16.msra.mxu0 %v1482_v18 }
 0x23a   :  { %676 = vmatmul.mubr.f32.vlgmr.msra.gmra.mrb[0].mxu0 %v417_v55 }
 0x23b   :  { %681 = vmatprep.mubr.f32.mxu0 %v1850_v0  ;;  %v1492_v0 = vpack.c.bf16 %v776_v38, %v774_v37  ;;  %v802_v37 = vld [vmem:[#allocation8 + $0x128] sm:$0xff]  ;;  %v804_v38 = vld [vmem:[#allocation8 + $0x138] sm:$0xff] }
 0x23c   :  { %v1520_v40 = vpack.c.bf16 %v804_v38, %v802_v37  ;;  %v520_v37 = vld [vmem:[#allocation13 + $0x19] ss:$8 sm:$0x3]  ;;  %v522_v38 = vld [vmem:[#allocation13 + $0x1a] ss:$8 sm:$0x3] }
 0x23d   :  { %1493 = vmatprep.subr.bf16.mxu1 %v1492_v0  ;;  %v801_v0 = vld [vmem:[#allocation8 + $0x120] sm:$0xff] }
 0x23e   :  { %682 = vmatmul.mubr.f32.gmra.mrb[2].mxu0 %v420_v60  ;;  %1495 = vmatpush1.bf16.msra.mxu1 %v1494_v46  ;;  %v1522_v43 = vpack.c.bf16 %v803_v42, %v801_v0  ;;  %v1524_v46 = vpack.c.bf16 %v808_v45, %v806_v44  ;;  %v731_v42 = vrot.slane %v520_v37, %v2013_v8 }
 0x23f   :  { %1497 = vmatprep.subr.bf16.mxu1 %v1496_v47  ;;  %v805_v47 = vld [vmem:[#allocation8 + $0x140] sm:$0xff] }
 0x240   :  { %v1526_v49 = vpack.c.bf16 %v807_v48, %v805_v47  ;;  %v750_v47 = vrot.slane %v522_v38, %v2015_v9 }
 0x242   :  { %1499 = vmatpush1.bf16.msra.mxu1 %v1498_v52  ;;  %v1528_v52 = vpack.c.bf16 %v812_v51, %v810_v50 }
 0x243   :  { %1501 = vmatprep.subr.bf16.mxu1 %v1500_v53  ;;  %v809_v53 = vld [vmem:[#allocation8 + $0x160] sm:$0xff] }
 0x244   :  { %v1530_v57 = vpack.c.bf16 %v811_v56, %v809_v53 }
 0x246   :  { %1503 = vmatpush1.bf16.msra.mxu1 %v1502_v61  ;;  %v1532_v61 = vpack.c.bf16 %v816_v59, %v814_v58 }
 0x247   :  { %1505 = vmatprep.subr.bf16.mxu1 %v1504_v62  ;;  %v813_v62 = vld [vmem:[#allocation8 + $0x180] sm:$0xff] }
 0x248   :  { %v1534_v1 = vpack.c.bf16 %v815_v17, %v813_v62 }
 0x24a   :  { %1507 = vmatpush1.bf16.msra.mxu1 %v1506_v3  ;;  %v817_v3 = vld [vmem:[#allocation8 + $0x1a0] sm:$0xff] }
 0x24b   :  { %1509 = vmatprep.subr.bf16.mxu1 %v1508_v4  ;;  %v819_v4 = vld [vmem:[#allocation8 + $0x1b0] sm:$0xff] }
 0x24c   :  { %v1538_v21 = vpack.c.bf16 %v819_v4, %v817_v3 }
 0x24e   :  { %1511 = vmatpush1.bf16.msra.mxu1 %v1510_v31  ;;  %v1540_v31 = vpack.c.bf16 %v824_v6, %v822_v5 }
 0x24f   :  { %1513 = vmatprep.subr.bf16.mxu1 %v1512_v41  ;;  %v821_v41 = vld [vmem:[#allocation8 + $0x1c0] sm:$0xff] }
 0x250   :  { %v1542_v10 = vpack.c.bf16 %v823_v63, %v821_v41 }
 0x252   :  { %1515 = vmatpush1.bf16.msra.mxu1 %v1514_v54  ;;  %v828_v54 = vld [vmem:[#allocation8 + $0x1f8] sm:$0xff] }
 0x253   :  { %1517 = vmatprep.subr.bf16.mxu1 %v1516_v33 }
 0x256   :  { %1519 = vmatpush1.bf16.msra.mxu1 %v1518_v36 }
 0x257   :  { %1521 = vmatprep.subr.bf16.mxu1 %v1520_v40 }
 0x25a   :  { %1523 = vmatpush1.bf16.msra.mxu1 %v1522_v43  ;;  %v735_v43 = vrot.slane %v520_v37, %v2015_v9 }
 0x25b   :  { %1525 = vmatprep.subr.bf16.mxu1 %v1524_v46  ;;  %v746_v46 = vrot.slane %v522_v38, %v2013_v8  ;;  %v1019_v38 = vld [vmem:[#allocation10 + $0xa0] sm:$0xff] }
 0x25e   :  { %1527 = vmatpush1.bf16.msra.mxu1 %v1526_v49 }
 0x25f   :  { %1529 = vmatprep.subr.bf16.mxu1 %v1528_v52 }
 0x262   :  { %1531 = vmatpush1.bf16.msra.mxu1 %v1530_v57 }
 0x263   :  { %1533 = vmatprep.subr.bf16.mxu1 %v1532_v61 }
 0x266   :  { %1535 = vmatpush1.bf16.msra.mxu1 %v1534_v1 }
 0x267   :  { %1537 = vmatprep.subr.bf16.mxu1 %v1536_v20 }
 0x26a   :  { %1539 = vmatpush1.bf16.msra.mxu1 %v1538_v21 }
 0x26b   :  { %1541 = vmatprep.subr.bf16.mxu1 %v1540_v31 }
 0x26e   :  { %1543 = vmatpush1.bf16.msra.mxu1 %v1542_v10 }
 0x30d   :  { %v677_v14 = vpop.f32.mrb[0].mxu0 }
 0x30e   :  { %v2102_v15 = vadd.f32 %v677_v14, %v527_v11  ;;  %v679_v27 = vpop.f32.mrb[1].mxu0  ;;  %v827_v14 = vld [vmem:[#allocation8 + $0x1f0] sm:$0xff] }
 0x30f   :  { %v2104_v39 = vadd.f32 %v679_v27, %v531_v12 }
 0x310   :  { %v697_v16 = vmul.f32 %v2102_v15, %v2102_v15 }
 0x311   :  { %v683_v18 = vpop.f32.mrb[2].mxu0  ;;  %v688_v19 = vadd.f32 %v2104_v39, %v2102_v15  ;;  %v698_v13 = vmul.f32 %v2104_v39, %v2104_v39 }
 0x312   :  { %v2112_v55 = vadd.f32 %v683_v18, %v527_v11  ;;  %v685_v23 = vpop.f32.mrb[3].mxu0  ;;  %v1544_v11 = vpack.c.bf16 %v828_v54, %v826_v7 }
 0x313   :  { %v2114_v60 = vadd.f32 %v685_v23, %v531_v12  ;;  %689 = vadd.xlane.f32.xlu0 %v688_v19  ;;  %v701_v24 = vadd.f32 %v698_v13, %v697_v16  ;;  %v825_v12 = vld [vmem:[#allocation8 + $0x1e0] sm:$0xff] }
 0x314   :  { %v699_v25 = vmul.f32 %v2112_v55, %v2112_v55  ;;  %v1546_v27 = vpack.c.bf16 %v827_v14, %v825_v12  ;;  %1545 = vmatprep.subr.bf16.mxu1 %v1544_v11 }
 0x315   :  { %702 = vadd.xlane.f32.xlu1 %v701_v24  ;;  %v691_v26 = vadd.f32 %v2114_v60, %v2112_v55  ;;  %v700_v28 = vmul.f32 %v2114_v60, %v2114_v60 }
 0x316   :  { %1547 = vmatpush1.bf16.msra.mxu1 %v1546_v27 }
 0x317   :  { %692 = vadd.xlane.f32.xlu0 %v691_v26  ;;  %v704_v29 = vadd.f32 %v700_v28, %v699_v25 }
 0x319   :  { %705 = vadd.xlane.f32.xlu1 %v704_v29 }
 0x3a0   :  { %v690_v16 = vpop.xlane.xlu0 %689 }
 0x3a1   :  { %v695_v18 = vmul.f32 0.00390625, %v690_v16 }
 0x3a2   :  { %v703_v19 = vpop.xlane.xlu1 %702 }
 0x3a3   :  { %v707_v13 = vmul.f32 0.00390625, %v703_v19  ;;  %v709_v23 = vmul.f32 %v695_v18, %v695_v18  ;;  %v715_v40 = vsub.f32 %v2102_v15, %v695_v18  ;;  %v716_v0 = vsub.f32 %v2104_v39, %v695_v18 }
 0x3a4   :  { %v693_v24 = vpop.xlane.xlu0 %692 }
 0x3a5   :  { %v711_v25 = vsub.f32 %v707_v13, %v709_v23  ;;  %v696_v26 = vmul.f32 0.00390625, %v693_v24  ;;  %v1015_v24 = vld [vmem:[#allocation10 + $0x80] sm:$0xff] }
 0x3a6   :  { %v706_v28 = vpop.xlane.xlu1 %705 }
 0x3a7   :  { %v713_v29 = vmax.f32 %v711_v25, 0.0  ;;  %v708_v30 = vmul.f32 0.00390625, %v706_v28  ;;  %v710_v32 = vmul.f32 %v696_v26, %v696_v26  ;;  %v717_v51 = vsub.f32 %v2112_v55, %v696_v26  ;;  %v1016_v25 = vld [vmem:[#allocation10 + $0x88] sm:$0xff]  ;;  %v999_v28 = vld [vmem:[#allocation10] sm:$0xff] }
 0x3a8   :  { %v718_v52 = vsub.f32 %v2114_v60, %v696_v26  ;;  %v830_v60 = vld [vmem:[#allocation13 + $0x30] ss:$8 sm:$0x3]  ;;  %v1548_v26 = vpack.c.bf16 %v1016_v25, %v1015_v24 }
 0x3a9   :  { %v719_v33 = vadd.f32 1e-05, %v713_v29  ;;  %v712_v34 = vsub.f32 %v708_v30, %v710_v32  ;;  %v839_v5 = vrot.slane %v830_v60, %v2013_v8  ;;  %v843_v6 = vrot.slane %v830_v60, %v2015_v9  ;;  %v1000_v29 = vld [vmem:[#allocation10 + $0x8] sm:$0xff]  ;;  %v1017_v32 = vld [vmem:[#allocation10 + $0x90] sm:$0xff] }
 0x3aa   :  { %v1550_v30 = vpack.c.bf16 %v1000_v29, %v999_v28  ;;  %1549 = vmatprep.subr.bf16.mxu1 %v1548_v26 }
 0x3ab   :  { %1639 = vrsqrt.f32 %v719_v33  ;;  %v714_v35 = vmax.f32 %v712_v34, 0.0  ;;  %v1018_v33 = vld [vmem:[#allocation10 + $0x98] sm:$0xff] }
 0x3ac   :  { %v1552_v34 = vpack.c.bf16 %v1018_v33, %v1017_v32  ;;  %v832_v32 = vld [vmem:[#allocation13 + $0x31] ss:$8 sm:$0x3]  ;;  %v834_v33 = vld [vmem:[#allocation13 + $0x32] ss:$8 sm:$0x3] }
 0x3ad   :  { %v720_v36 = vadd.f32 1e-05, %v714_v35  ;;  %v1001_v35 = vld [vmem:[#allocation10 + $0x10] sm:$0xff] }
 0x3af   :  { %1641 = vrsqrt.f32 %v720_v36  ;;  %v1002_v36 = vld [vmem:[#allocation10 + $0x18] sm:$0xff] }
 0x3b0   :  { %v1554_v37 = vpack.c.bf16 %v1002_v36, %v1001_v35  ;;  %v965_v36 = vrot.slane %v832_v32, %v2013_v8 }
 0x3b5   :  { %v1640_v44 = vpop.eup %1639 }
 0x3b6   :  { %v724_v45 = vmul.f32 %v1640_v44, %v716_v0  ;;  %v723_v48 = vmul.f32 %v1640_v44, %v715_v40  ;;  %v1020_v40 = vld [vmem:[#allocation10 + $0xa8] sm:$0xff] }
 0x3b7   :  { %v1556_v0 = vpack.c.bf16 %v1020_v40, %v1019_v38 }
 0x3b8   :  { %v739_v49 = vmul.f32 %v735_v43, %v724_v45  ;;  %v738_v50 = vmul.f32 %v731_v42, %v723_v48  ;;  %v1021_v45 = vld [vmem:[#allocation10 + $0xb0] sm:$0xff] }
 0x3b9   :  { %v1642_v15 = vpop.eup %1641  ;;  %v1005_v48 = vld [vmem:[#allocation10 + $0x30] sm:$0xff] }
 0x3ba   :  { %v754_v53 = vadd.f32 %v750_v47, %v739_v49  ;;  %v753_v39 = vadd.f32 %v746_v46, %v738_v50  ;;  %v726_v56 = vmul.f32 %v1642_v15, %v718_v52  ;;  %v725_v57 = vmul.f32 %v1642_v15, %v717_v51  ;;  %v1006_v49 = vld [vmem:[#allocation10 + $0x38] sm:$0xff]  ;;  %v1023_v51 = vld [vmem:[#allocation10 + $0xc0] sm:$0xff]  ;;  %v1024_v52 = vld [vmem:[#allocation10 + $0xc8] sm:$0xff] }
 0x3bb   :  { %v1562_v50 = vpack.c.bf16 %v1006_v49, %v1005_v48  ;;  %v1564_v15 = vpack.c.bf16 %v1024_v52, %v1023_v51 }
 0x3bc   :  { %v758_v58 = vmul.f32 0.1, %v754_v53  ;;  %v757_v59 = vmul.f32 0.1, %v753_v39  ;;  %v741_v61 = vmul.f32 %v735_v43, %v726_v56  ;;  %v740_v62 = vmul.f32 %v731_v42, %v725_v57  ;;  %v1003_v42 = vld [vmem:[#allocation10 + $0x20] sm:$0xff]  ;;  %v1004_v43 = vld [vmem:[#allocation10 + $0x28] sm:$0xff] }
 0x3bd   :  { %v1558_v44 = vpack.c.bf16 %v1004_v43, %v1003_v42  ;;  %v1025_v57 = vld [vmem:[#allocation10 + $0xd0] sm:$0xff]  ;;  %v980_v42 = vrot.slane %v834_v33, %v2013_v8  ;;  %v984_v43 = vrot.slane %v834_v33, %v2015_v9  ;;  %v1161_v33 = vld [vmem:[#allocation11 + $0x78] sm:$0xff] }
 0x3be   :  { %v762_v17 = vmax.f32 %v754_v53, %v758_v58  ;;  %v761_v22 = vmax.f32 %v753_v39, %v757_v59  ;;  %v756_v1 = vadd.f32 %v750_v47, %v741_v61  ;;  %v755_v2 = vadd.f32 %v746_v46, %v740_v62  ;;  %v1022_v46 = vld [vmem:[#allocation10 + $0xb8] sm:$0xff]  ;;  %v1007_v53 = vld [vmem:[#allocation10 + $0x40] sm:$0xff]  ;;  %v1008_v39 = vld [vmem:[#allocation10 + $0x48] sm:$0xff] }
 0x3bf   :  { %v1560_v47 = vpack.c.bf16 %v1022_v46, %v1021_v45  ;;  %v1566_v56 = vpack.c.bf16 %v1008_v39, %v1007_v53  ;;  %v1026_v58 = vld [vmem:[#allocation10 + $0xd8] sm:$0xff]  ;;  %v1009_v61 = vld [vmem:[#allocation10 + $0x50] sm:$0xff] }
 0x3c0   :  { %910 = vmatprep.mubr.f32.mxu1 %v762_v17  ;;  %v760_v3 = vmul.f32 0.1, %v756_v1  ;;  %v759_v4 = vmul.f32 0.1, %v755_v2  ;;  %v1568_v59 = vpack.c.bf16 %v1026_v58, %v1025_v57  ;;  %v1010_v62 = vld [vmem:[#allocation10 + $0x58] sm:$0xff] }
 0x3c1   :  { %911 = vmatmul.mubr.f32.vlgmr.msra.gmra.mrb[6].mxu1 %v761_v22  ;;  %v1570_v17 = vpack.c.bf16 %v1010_v62, %v1009_v61  ;;  %v1027_v22 = vld [vmem:[#allocation10 + $0xe0] sm:$0xff]  ;;  %v1031_v61 = vld [vmem:[#allocation13 + $0x48] ss:$0 sm:$0xff] }
 0x3c2   :  { %v764_v55 = vmax.f32 %v756_v1, %v760_v3  ;;  %v763_v20 = vmax.f32 %v755_v2, %v759_v4  ;;  %1551 = vmatpush3.bf16.msra.mxu1 %v1550_v30  ;;  %v1028_v1 = vld [vmem:[#allocation10 + $0xe8] sm:$0xff]  ;;  %v1011_v2 = vld [vmem:[#allocation10 + $0x60] sm:$0xff] }
 0x3c3   :  { %1553 = vmatprep.subr.bf16.mxu1 %v1552_v34  ;;  %v1572_v3 = vpack.c.bf16 %v1028_v1, %v1027_v22  ;;  %v1012_v4 = vld [vmem:[#allocation10 + $0x68] sm:$0xff] }
 0x3c4   :  { %916 = vmatprep.mubr.f32.mxu1 %v764_v55  ;;  %v1029_v55 = vld [vmem:[#allocation10 + $0xf0] sm:$0xff]  ;;  %v1574_v60 = vpack.c.bf16 %v1012_v4, %v1011_v2 }
 0x3c5   :  { %917 = vmatmul.mubr.f32.gmra.mrb[8].mxu1 %v763_v20  ;;  %v1030_v20 = vld [vmem:[#allocation10 + $0xf8] sm:$0xff] }
 0x3c6   :  { %1555 = vmatpush3.bf16.msra.mxu1 %v1554_v37  ;;  %v969_v37 = vrot.slane %v832_v32, %v2015_v9  ;;  %v1160_v32 = vld [vmem:[#allocation11 + $0x70] sm:$0xff] }
 0x3c7   :  { %1557 = vmatprep.subr.bf16.mxu1 %v1556_v0 }
 0x3ca   :  { %1559 = vmatpush3.bf16.msra.mxu1 %v1558_v44 }
 0x3cb   :  { %1561 = vmatprep.subr.bf16.mxu1 %v1560_v47 }
 0x3ce   :  { %1563 = vmatpush3.bf16.msra.mxu1 %v1562_v50 }
 0x3cf   :  { %1565 = vmatprep.subr.bf16.mxu1 %v1564_v15 }
 0x3d2   :  { %1567 = vmatpush3.bf16.msra.mxu1 %v1566_v56 }
 0x3d3   :  { %1569 = vmatprep.subr.bf16.mxu1 %v1568_v59 }
 0x3d6   :  { %1571 = vmatpush3.bf16.msra.mxu1 %v1570_v17 }
 0x3d7   :  { %1573 = vmatprep.subr.bf16.mxu1 %v1572_v3 }
 0x3da   :  { %1575 = vmatpush3.bf16.msra.mxu1 %v1574_v60  ;;  %v1146_v60 = vld [vmem:[#allocation11] sm:$0xff] }
 0x494   :  { %v912_v21 = vpop.f32.mrb[6].mxu1 }
 0x495   :  { %v2132_v31 = vadd.f32 %v912_v21, %v839_v5  ;;  %v914_v41 = vpop.f32.mrb[7].mxu1  ;;  %v1014_v21 = vld [vmem:[#allocation10 + $0x78] sm:$0xff] }
 0x496   :  { %v2134_v63 = vadd.f32 %v914_v41, %v843_v6 }
 0x497   :  { %v931_v7 = vmul.f32 %v2132_v31, %v2132_v31 }
 0x498   :  { %v923_v54 = vadd.f32 %v2134_v63, %v2132_v31  ;;  %v932_v10 = vmul.f32 %v2134_v63, %v2134_v63  ;;  %v918_v11 = vpop.f32.mrb[8].mxu1 }
 0x499   :  { %v2142_v12 = vadd.f32 %v918_v11, %v839_v5  ;;  %v920_v14 = vpop.f32.mrb[9].mxu1  ;;  %v1576_v5 = vpack.c.bf16 %v1030_v20, %v1029_v55 }
 0x49a   :  { %924 = vadd.xlane.f32.xlu0 %v923_v54  ;;  %v935_v27 = vadd.f32 %v932_v10, %v931_v7  ;;  %v2144_v16 = vadd.f32 %v920_v14, %v843_v6  ;;  %v1013_v6 = vld [vmem:[#allocation10 + $0x70] sm:$0xff] }
 0x49b   :  { %v933_v18 = vmul.f32 %v2142_v12, %v2142_v12  ;;  %v1578_v41 = vpack.c.bf16 %v1014_v21, %v1013_v6  ;;  %1577 = vmatprep.subr.bf16.mxu1 %v1576_v5  ;;  %v1147_v5 = vld [vmem:[#allocation11 + $0x8] sm:$0xff]  ;;  %v1148_v21 = vld [vmem:[#allocation11 + $0x10] sm:$0xff] }
 0x49c   :  { %936 = vadd.xlane.f32.xlu1 %v935_v27  ;;  %v926_v19 = vadd.f32 %v2144_v16, %v2142_v12  ;;  %v934_v13 = vmul.f32 %v2144_v16, %v2144_v16  ;;  %v1580_v6 = vpack.c.bf16 %v1147_v5, %v1146_v60 }
 0x49d   :  { %1579 = vmatpush3.bf16.msra.mxu1 %v1578_v41  ;;  %v1149_v41 = vld [vmem:[#allocation11 + $0x18] sm:$0xff] }
 0x49e   :  { %927 = vadd.xlane.f32.xlu0 %v926_v19  ;;  %v938_v23 = vadd.f32 %v934_v13, %v933_v18  ;;  %1581 = vmatprep.subr.bf16.mxu0 %v1580_v6 }
 0x49f   :  { %1583 = vmatpush3.bf16.msra.mxu0 %v1580_v6 }
 0x4a0   :  { %939 = vadd.xlane.f32.xlu1 %v938_v23 }
 0x527   :  { %v925_v7 = vpop.xlane.xlu0 %924 }
 0x528   :  { %v929_v54 = vmul.f32 0.00390625, %v925_v7  ;;  %v1584_v7 = vpack.c.bf16 %v1149_v41, %v1148_v21 }
 0x529   :  { %v937_v10 = vpop.xlane.xlu1 %936 }
 0x52a   :  { %v941_v11 = vmul.f32 0.00390625, %v937_v10  ;;  %v943_v14 = vmul.f32 %v929_v54, %v929_v54  ;;  %v949_v34 = vsub.f32 %v2132_v31, %v929_v54  ;;  %v950_v35 = vsub.f32 %v2134_v63, %v929_v54  ;;  %1585 = vmatprep.subr.bf16.mxu0 %v1584_v7  ;;  %v1150_v54 = vld [vmem:[#allocation11 + $0x20] sm:$0xff]  ;;  %v1151_v10 = vld [vmem:[#allocation11 + $0x28] sm:$0xff] }
 0x52b   :  { %v928_v18 = vpop.xlane.xlu0 %927  ;;  %1587 = vmatpush3.bf16.msra.mxu0 %v1584_v7 }
 0x52c   :  { %v945_v27 = vsub.f32 %v941_v11, %v943_v14  ;;  %v930_v19 = vmul.f32 0.00390625, %v928_v18  ;;  %v1588_v11 = vpack.c.bf16 %v1151_v10, %v1150_v54  ;;  %v1152_v14 = vld [vmem:[#allocation11 + $0x30] sm:$0xff] }
 0x52d   :  { %v940_v23 = vpop.xlane.xlu1 %939 }
 0x52e   :  { %v947_v13 = vmax.f32 %v945_v27, 0.0  ;;  %v942_v24 = vmul.f32 0.00390625, %v940_v23  ;;  %v944_v25 = vmul.f32 %v930_v19, %v930_v19  ;;  %v951_v46 = vsub.f32 %v2142_v12, %v930_v19  ;;  %1589 = vmatprep.subr.bf16.mxu0 %v1588_v11  ;;  %v1153_v27 = vld [vmem:[#allocation11 + $0x38] sm:$0xff]  ;;  %v1156_v23 = vld [vmem:[#allocation11 + $0x50] sm:$0xff] }
 0x52f   :  { %v952_v47 = vsub.f32 %v2144_v16, %v930_v19  ;;  %1591 = vmatpush3.bf16.msra.mxu0 %v1588_v11  ;;  %v1592_v18 = vpack.c.bf16 %v1153_v27, %v1152_v14  ;;  %v1154_v19 = vld [vmem:[#allocation11 + $0x40] sm:$0xff] }
 0x530   :  { %v953_v26 = vadd.f32 1e-05, %v947_v13  ;;  %v946_v28 = vsub.f32 %v942_v24, %v944_v25  ;;  %v1155_v13 = vld [vmem:[#allocation11 + $0x48] sm:$0xff]  ;;  %v1157_v25 = vld [vmem:[#allocation11 + $0x58] sm:$0xff] }
 0x531   :  { %1593 = vmatprep.subr.bf16.mxu0 %v1592_v18  ;;  %v1596_v24 = vpack.c.bf16 %v1155_v13, %v1154_v19 }
 0x532   :  { %1643 = vrsqrt.f32 %v953_v26  ;;  %v948_v29 = vmax.f32 %v946_v28, 0.0  ;;  %v1600_v26 = vpack.c.bf16 %v1157_v25, %v1156_v23  ;;  %v1158_v28 = vld [vmem:[#allocation11 + $0x60] sm:$0xff] }
 0x533   :  { %1595 = vmatpush3.bf16.msra.mxu0 %v1592_v18 }
 0x534   :  { %v954_v30 = vadd.f32 1e-05, %v948_v29  ;;  %1597 = vmatprep.subr.bf16.mxu0 %v1596_v24  ;;  %v1159_v29 = vld [vmem:[#allocation11 + $0x68] sm:$0xff] }
 0x536   :  { %1645 = vrsqrt.f32 %v954_v30  ;;  %v1604_v30 = vpack.c.bf16 %v1159_v29, %v1158_v28 }
 0x537   :  { %1599 = vmatpush3.bf16.msra.mxu0 %v1596_v24 }
 0x538   :  { %1601 = vmatprep.subr.bf16.mxu0 %v1600_v26 }
 0x53b   :  { %1603 = vmatpush3.bf16.msra.mxu0 %v1600_v26 }
 0x53c   :  { %v1644_v38 = vpop.eup %1643  ;;  %1605 = vmatprep.subr.bf16.mxu0 %v1604_v30 }
 0x53d   :  { %v957_v40 = vmul.f32 %v1644_v38, %v949_v34  ;;  %v958_v0 = vmul.f32 %v1644_v38, %v950_v35  ;;  %v1608_v34 = vpack.c.bf16 %v1161_v33, %v1160_v32 }
 0x53f   :  { %v972_v44 = vmul.f32 %v965_v36, %v957_v40  ;;  %v973_v45 = vmul.f32 %v969_v37, %v958_v0  ;;  %1607 = vmatpush3.bf16.msra.mxu0 %v1604_v30 }
 0x540   :  { %v1646_v31 = vpop.eup %1645  ;;  %1609 = vmatprep.subr.bf16.mxu0 %v1608_v34 }
 0x541   :  { %v987_v48 = vadd.f32 %v980_v42, %v972_v44  ;;  %v988_v63 = vadd.f32 %v984_v43, %v973_v45  ;;  %v960_v49 = vmul.f32 %v1646_v31, %v952_v47  ;;  %v959_v50 = vmul.f32 %v1646_v31, %v951_v46 }
 0x543   :  { %v992_v51 = vmul.f32 0.1, %v988_v63  ;;  %v991_v52 = vmul.f32 0.1, %v987_v48  ;;  %v975_v15 = vmul.f32 %v969_v37, %v960_v49  ;;  %v974_v53 = vmul.f32 %v965_v36, %v959_v50  ;;  %1611 = vmatpush3.bf16.msra.mxu0 %v1608_v34 }
 0x545   :  { %v996_v39 = vmax.f32 %v988_v63, %v992_v51  ;;  %v995_v56 = vmax.f32 %v987_v48, %v991_v52  ;;  %v990_v8 = vadd.f32 %v984_v43, %v975_v15  ;;  %v989_v57 = vadd.f32 %v980_v42, %v974_v53  ;;  %v1032_v52 = vld [vmem:[#allocation13 + $0x49] ss:$0 sm:$0xff]  ;;  %v1033_v53 = vld [vmem:[#allocation13 + $0x4a] ss:$0 sm:$0xff] }
 0x547   :  { %1098 = vmatprep.mubr.f32.mxu1 %v996_v39  ;;  %v994_v9 = vmul.f32 0.1, %v990_v8  ;;  %v993_v58 = vmul.f32 0.1, %v989_v57 }
 0x548   :  { %1099 = vmatmul.mubr.f32.vlgmr.msra.gmra.mrb[10].mxu1 %v995_v56 }
 0x549   :  { %v998_v12 = vmax.f32 %v990_v8, %v994_v9  ;;  %v997_v59 = vmax.f32 %v989_v57, %v993_v58 }
 0x54b   :  { %1103 = vmatprep.mubr.f32.mxu1 %v998_v12 }
 0x54c   :  { %1104 = vmatmul.mubr.f32.gmra.mrb[12].mxu1 %v997_v59 }
 0x61b   :  { %v1302_v16 = vpop.f32.mrb[10].mxu1 }
 0x61c   :  { %v1303_v62 = vpop.f32.mrb[11].mxu1 }
 0x61d   :  { %v1304_v17 = vadd.f32 %v1303_v62, %v1302_v16 }
 0x61f   :  { %v2160_v22 = vadd.f32 %v1304_v17, %v1031_v61  ;;  %v1305_v1 = vpop.f32.mrb[12].mxu1  ;;  %v1162_v17 = vld [vmem:[#allocation13 + $0x60] ss:$0 sm:$0xff] }
 0x620   :  { %v1306_v2 = vpop.f32.mrb[13].mxu1 }
 0x621   :  { %1109 = vadd.xlane.f32.xlu0 %v2160_v22  ;;  %v1307_v3 = vadd.f32 %v1306_v2, %v1305_v1  ;;  %v1116_v4 = vmul.f32 %v2160_v22, %v2160_v22 }
 0x623   :  { %v2165_v55 = vadd.f32 %v1307_v3, %v1031_v61 }
 0x625   :  { %1118 = vadd.xlane.f32.xlu0 %v1116_v4  ;;  %1111 = vadd.xlane.f32.xlu1 %v2165_v55  ;;  %v1117_v20 = vmul.f32 %v2165_v55, %v2165_v55 }
 0x629   :  { %1120 = vadd.xlane.f32.xlu1 %v1117_v20 }
 0x6ae   :  { %v1110_v35 = vpop.xlane.xlu0 %1109 }
 0x6af   :  { %v1114_v36 = vmul.f32 0.0078125, %v1110_v35 }
 0x6b1   :  { %v1124_v38 = vmul.f32 %v1114_v36, %v1114_v36  ;;  %v1130_v50 = vsub.f32 %v2160_v22, %v1114_v36 }
 0x6b2   :  { %v1119_v37 = vpop.xlane.xlu0 %1118  ;;  %v1112_v40 = vpop.xlane.xlu1 %1111 }
 0x6b3   :  { %v1122_v0 = vmul.f32 0.0078125, %v1119_v37  ;;  %v1115_v42 = vmul.f32 0.0078125, %v1112_v40 }
 0x6b5   :  { %v1126_v43 = vsub.f32 %v1122_v0, %v1124_v38  ;;  %v1125_v46 = vmul.f32 %v1115_v42, %v1115_v42  ;;  %v1131_v56 = vsub.f32 %v2165_v55, %v1115_v42 }
 0x6b6   :  { %v1121_v45 = vpop.xlane.xlu1 %1120 }
 0x6b7   :  { %v1128_v44 = vmax.f32 %v1126_v43, 0.0  ;;  %v1123_v47 = vmul.f32 0.0078125, %v1121_v45 }
 0x6b9   :  { %v1132_v31 = vadd.f32 1e-05, %v1128_v44  ;;  %v1127_v48 = vsub.f32 %v1123_v47, %v1125_v46 }
 0x6bb   :  { %1647 = vrsqrt.f32 %v1132_v31  ;;  %v1129_v63 = vmax.f32 %v1127_v48, 0.0 }
 0x6bd   :  { %v1133_v49 = vadd.f32 1e-05, %v1129_v63 }
 0x6bf   :  { %1649 = vrsqrt.f32 %v1133_v49 }
 0x6c5   :  { %v1648_v51 = vpop.eup %1647 }
 0x6c6   :  { %v1136_v15 = vmul.f32 %v1648_v51, %v1130_v50 }
 0x6c8   :  { %v1138_v39 = vmul.f32 %v1136_v15, %v1032_v52 }
 0x6c9   :  { %v1650_v8 = vpop.eup %1649 }
 0x6ca   :  { %v1140_v57 = vadd.f32 %v1138_v39, %v1033_v53  ;;  %v1137_v9 = vmul.f32 %v1650_v8, %v1131_v56 }
 0x6cc   :  { %v1142_v58 = vmul.f32 0.1, %v1140_v57  ;;  %v1139_v12 = vmul.f32 %v1137_v9, %v1032_v52 }
 0x6ce   :  { %v1144_v59 = vmax.f32 %v1140_v57, %v1142_v58  ;;  %v1141_v16 = vadd.f32 %v1139_v12, %v1033_v53 }
 0x6d0   :  { %1369 = vmatprep.mubr.f32.mxu0 %v1144_v59  ;;  %v1143_v61 = vmul.f32 0.1, %v1141_v16 }
 0x6d2   :  { %v1145_v62 = vmax.f32 %v1141_v16, %v1143_v61 }
 0x6d4   :  { %1370 = vmatmul.mubr.f32.vlgmr.msra.gmra.mrb[4].mxu0 %v1145_v62 }
 0x7a7   :  { %v1371_v22 = vpop.f32.mrb[4].mxu0 }
 0x7a8   :  { %v1235_v1 = vadd.f32 %v1371_v22, %v1162_v17  ;;  %v1229_v2 = vpop.f32.mrb[5].mxu0 }
 0x7a9   :  { %v1230_v3 = vadd.f32 %v1229_v2, %v1162_v17 }
 0x7aa   :  { %1239 = vst [vmem:[#allocation14 + $0x8] sm:$0xff] %v1235_v1 }
 0x7ab   :  { %1238 = vst [vmem:[#allocation14] sm:$0xff] %v1230_v3 }
 0x7ac   :  { %1816 = shalt.err (!%p1813_p4)
}
 0x7ad   :  { %s1817_s24 = scalar_lea.hbm %s2194_s7, 256 }
 0x7ae   :  { %p1818_p5 = scmp.ne.s32.totalorder %s2194_s7, %s1817_s24  ;;  %p1821_p6 = scmp.lt.u32.totalorder %s1817_s24, %s2194_s7 }
 0x7b0   :  { %p1823_p7 = pnand %p1821_p6, %p1818_p5 }
 0x7b2   :  { %1826 = shalt.err (!%p1823_p7)
}
 0x7b3   :  { %1251 = dma.vmem_to_hbm [thread:$0]  %s1246_s11, 256, %s2194_s7, [#allocation4], %s1845_s16, %s1845_s16, %s1846_s19  }
 0x7b4   :  { %1835 = dma.done.wait [#allocation4], 256  }
 0x7b5   :  { %1836 = vsyncadd [#allocation4], 4294967040 }
 0x7b6   :  { %1255 = vsyncpa [#allocation3], 1 }
 0x7b7   :  { %1256 = vsyncpa [#allocation6], 1 }
 0x7b8   :  { %1257 = vsyncpa [#allocation9], 1 }
 0x7b9   :  { %1258 = vsyncpa [#allocation12], 1 }
 0x7ba   :  { %1259 = vsyncpa [#allocation4], 1 }

</bundles_post_ra>
